<compile_context>
chip_gen: v6e
topology: v6e:2x2x1
jax: 0.10.0
libtpu: 0.0.40
codegen_flags: <defaults>
</compile_context>

<pallas_src>
import jax
import jax.numpy as jnp
from jax.experimental import pallas as pl
from jax.experimental.pallas import tpu as pltpu

HSIZE, ZSIZE, REZ = 2, 8, 6
DIN = HSIZE + ZSIZE                 # 10
DOUT = (HSIZE + 1) * REZ            # 18
DOUT_PAD = 128                      # lane-dense padded output width
HID = 512


def spawnnet_kernel(x_ref, w1_ref, b1_ref, w2_ref, b2_ref, w3_ref, b3_ref,
                    w4_ref, b4_ref, out_ref):
    # Layer 1: single fused (TB, 10) x (10, 512) dot, f32 accumulation.
    h = jnp.dot(x_ref[...], w1_ref[...], preferred_element_type=jnp.float32)
    # Bias-add / ReLU run in the bias dtype (bf16 on v6e/v7x, f32 on v5e).
    h = jnp.maximum(h.astype(b1_ref.dtype) + b1_ref[...], 0)
    # Layers 2/3: 512x512 bf16 matmuls, f32 accumulation.
    h = jnp.dot(h.astype(jnp.bfloat16), w2_ref[...],
                preferred_element_type=jnp.float32)
    h = jnp.maximum(h.astype(b2_ref.dtype) + b2_ref[...], 0)
    h = jnp.dot(h.astype(jnp.bfloat16), w3_ref[...],
                preferred_element_type=jnp.float32)
    h = jnp.maximum(h.astype(b3_ref.dtype) + b3_ref[...], 0)
    # Layer 4: lane-dense (512 x 128) padded output matmul, f32 epilogue.
    y = jnp.dot(h.astype(jnp.bfloat16), w4_ref[...],
                preferred_element_type=jnp.float32) + b4_ref[...]
    # Flat output columns are grouped as (hsize+1)=3 per rez slot; column 2 of
    # each group is the activation channel -> sigmoid.  Padded columns (>=18)
    # have zero weights/bias and are sliced off in the wrapper.
    col = jax.lax.broadcasted_iota(jnp.int32, y.shape, dimension=1)
    is_act = (col % (HSIZE + 1)) == HSIZE
    out_ref[...] = jnp.where(is_act, jax.nn.sigmoid(y), y)


def init_params(key):
    """PyTorch nn.Linear-style init; weights stored as (din, dout), f32."""
    ks = jax.random.split(key, 8)

    def lin(kw, kb, din, dout):
        bound = 1.0 / jnp.sqrt(din)
        w = jax.random.uniform(kw, (din, dout), jnp.float32, -bound, bound)
        b = jax.random.uniform(kb, (1, dout), jnp.float32, -bound, bound)
        return w, b

    w1, b1 = lin(ks[0], ks[1], DIN, HID)
    w2, b2 = lin(ks[2], ks[3], HID, HID)
    w3, b3 = lin(ks[4], ks[5], HID, HID)
    w4, b4 = lin(ks[6], ks[7], HID, DOUT)
    return (w1, b1, w2, b2, w3, b3, w4, b4)


def _round8(n):
    return ((n + 7) // 8) * 8


def _use_bf16_elementwise():
    """bf16 VPU path only on chips with native bf16 VALU (v6e / v7x)."""
    try:
        kind = jax.devices()[0].device_kind.lower()
    except Exception:
        return False
    return ("v6" in kind) or ("v7" in kind)


def _prep_params(params, bf16_elementwise):
    """Cast weights to bf16; biases to the elementwise dtype; pad w4/b4 to 128."""
    w1, b1, w2, b2, w3, b3, w4, b4 = params
    bdt = jnp.bfloat16 if bf16_elementwise else jnp.float32
    w4p = jnp.zeros((HID, DOUT_PAD), jnp.bfloat16).at[:, :DOUT].set(
        w4.astype(jnp.bfloat16))
    b4p = jnp.zeros((1, DOUT_PAD), jnp.float32).at[:, :DOUT].set(
        b4.astype(jnp.float32))
    return (w1.astype(jnp.bfloat16), b1.astype(bdt),
            w2.astype(jnp.bfloat16), b2.astype(bdt),
            w3.astype(jnp.bfloat16), b3.astype(bdt),
            w4p, b4p)


def spawnnet_forward(hparent, zvar, params, concat=True, tb=2048):
    B = hparent.shape[0]
    # Cap tile rows (v7x VMEM is 64 MiB; TB=2048 keeps activations ~30 MiB).
    tb = max(8, min(int(tb), 2048))
    # Number of grid steps: enough that no tile exceeds `tb` rows; at least 2
    # when B > 8 so the "parallel" axis can shard across v7x's two TCs; TB is
    # then round8(ceil(B/steps)) which minimizes batch-padding waste.
    steps = max(1, -(-B // tb))
    if steps == 1 and B > 8:
        steps = 2
    TB = max(8, _round8(-(-B // steps)))
    Bp = steps * TB

    # Fused layer-1 input: concat + pre-cast to bf16 in the wrapper.
    x = jnp.concatenate([jnp.asarray(hparent, jnp.float32),
                         jnp.asarray(zvar, jnp.float32)],
                        axis=-1).astype(jnp.bfloat16)
    if Bp != B:
        x = jnp.pad(x, ((0, Bp - B), (0, 0)))

    bf16_ew = _use_bf16_elementwise()
    w1, b1, w2, b2, w3, b3, w4p, b4p = _prep_params(params, bf16_ew)

    def batch_map(i):
        return (i, 0)

    def resident(i):          # constant block index -> weights stay in VMEM
        return (0, 0)

    in_specs = [
        pl.BlockSpec((TB, DIN), batch_map),
        pl.BlockSpec(w1.shape, resident),
        pl.BlockSpec(b1.shape, resident),
        pl.BlockSpec(w2.shape, resident),
        pl.BlockSpec(b2.shape, resident),
        pl.BlockSpec(w3.shape, resident),
        pl.BlockSpec(b3.shape, resident),
        pl.BlockSpec(w4p.shape, resident),
        pl.BlockSpec(b4p.shape, resident),
    ]

    flops = 2 * Bp * (DIN * HID + 2 * HID * HID + HID * DOUT_PAD)
    bytes_accessed = (x.size * x.dtype.itemsize + Bp * DOUT_PAD * 4
                      + sum(int(a.size) * a.dtype.itemsize
                            for a in (w1, b1, w2, b2, w3, b3, w4p, b4p)))

    flat = pl.pallas_call(
        spawnnet_kernel,
        out_shape=jax.ShapeDtypeStruct((Bp, DOUT_PAD), jnp.float32),
        grid=(Bp // TB,),
        in_specs=in_specs,
        out_specs=pl.BlockSpec((TB, DOUT_PAD), batch_map),
        compiler_params=pltpu.CompilerParams(
            dimension_semantics=("parallel",),
            vmem_limit_bytes=48 * 1024 * 1024),
        cost_estimate=pl.CostEstimate(
            flops=flops,
            transcendentals=Bp * DOUT_PAD,
            bytes_accessed=bytes_accessed),
    )(x, w1, b1, w2, b2, w3, b3, w4p, b4p)

    out = flat[:B, :DOUT].reshape(B, REZ, HSIZE + 1)
    if concat:
        return out
    return out[:, :, :HSIZE], out[:, :, HSIZE]


def spawnnet_ref(hparent, zvar, params):
    """Pure-JAX reference mirroring the kernel's precision choices."""
    bf16_ew = _use_bf16_elementwise()
    edt = jnp.bfloat16 if bf16_ew else jnp.float32
    w1, b1, w2, b2, w3, b3, w4, b4 = params
    x = jnp.concatenate([hparent, zvar], axis=-1).astype(jnp.bfloat16)
    h = jnp.dot(x, w1.astype(jnp.bfloat16), preferred_element_type=jnp.float32)
    h = jnp.maximum(h.astype(edt) + b1.astype(edt), 0)
    h = jnp.dot(h.astype(jnp.bfloat16), w2.astype(jnp.bfloat16),
                preferred_element_type=jnp.float32)
    h = jnp.maximum(h.astype(edt) + b2.astype(edt), 0)
    h = jnp.dot(h.astype(jnp.bfloat16), w3.astype(jnp.bfloat16),
                preferred_element_type=jnp.float32)
    h = jnp.maximum(h.astype(edt) + b3.astype(edt), 0)
    y = (jnp.dot(h.astype(jnp.bfloat16), w4.astype(jnp.bfloat16),
                 preferred_element_type=jnp.float32) + b4)
    y = y.reshape(-1, REZ, HSIZE + 1)
    hout, hact = y[:, :, :HSIZE], jax.nn.sigmoid(y[:, :, HSIZE])
    return jnp.concatenate([hout, hact[:, :, None]], axis=-1)


if __name__ == "__main__":
    key = jax.random.PRNGKey(0)
    kp, kh, kz = jax.random.split(key, 3)
    params = init_params(kp)

    # Small deterministic inputs (batch=8).
    batch = 8
    hparent = jax.random.normal(kh, (batch, HSIZE), jnp.float32)
    zvar = jax.random.uniform(kz, (batch, ZSIZE), jnp.float32)  # init_noise analogue

    out = spawnnet_forward(hparent, zvar, params, concat=True)
    out = jax.block_until_ready(out)

    ref = spawnnet_ref(hparent, zvar, params)
    assert out.shape == (batch, REZ, HSIZE + 1)
    assert jnp.allclose(out, ref, atol=2e-2, rtol=2e-2), (
        float(jnp.max(jnp.abs(out - ref))))

    # concat=False path (shape check).
    hout, hact = spawnnet_forward(hparent, zvar, params, concat=False)
    assert hout.shape == (batch, REZ, HSIZE) and hact.shape == (batch, REZ)

    # Exercise the multi-tile / padded-batch path (>=2 grid steps).
    batch2 = 300
    hp2 = jax.random.normal(kh, (batch2, HSIZE), jnp.float32)
    zv2 = jax.random.uniform(kz, (batch2, ZSIZE), jnp.float32)
    out2 = jax.block_until_ready(spawnnet_forward(hp2, zv2, params, tb=128))
    ref2 = spawnnet_ref(hp2, zv2, params)
    assert out2.shape == (batch2, REZ, HSIZE + 1)
    assert jnp.allclose(out2, ref2, atol=2e-2, rtol=2e-2), (
        float(jnp.max(jnp.abs(out2 - ref2))))

    print("KERNEL_OK")
</pallas_src>

<mosaic_0001>
module attributes {stable_mosaic.version = 11 : i64} {
  func.func @spawnnet_kernel(%arg0: i32, %arg1: memref<8x10xbf16, #tpu.memory_space<vmem>>, %arg2: memref<10x512xbf16, #tpu.memory_space<vmem>>, %arg3: memref<1x512xf32, #tpu.memory_space<vmem>>, %arg4: memref<512x512xbf16, #tpu.memory_space<vmem>>, %arg5: memref<1x512xf32, #tpu.memory_space<vmem>>, %arg6: memref<512x512xbf16, #tpu.memory_space<vmem>>, %arg7: memref<1x512xf32, #tpu.memory_space<vmem>>, %arg8: memref<512x128xbf16, #tpu.memory_space<vmem>>, %arg9: memref<1x128xf32, #tpu.memory_space<vmem>>, %arg10: memref<8x128xf32, #tpu.memory_space<vmem>>) attributes {dimension_semantics = [#tpu.dimension_semantics<parallel>], iteration_bounds = array<i64: 1>, scalar_prefetch = 0 : i64, scratch_operands = 0 : i64, tpu.core_type = #tpu.core_type<tc>, window_params = [{transform_indices = @transform_0, window_bounds = array<i64: 8, 10>}, {pipeline_mode = #tpu.pipeline_mode<synchronous>, transform_indices = @transform_1, window_bounds = array<i64: 10, 512>}, {pipeline_mode = #tpu.pipeline_mode<synchronous>, transform_indices = @transform_2, window_bounds = array<i64: 1, 512>}, {pipeline_mode = #tpu.pipeline_mode<synchronous>, transform_indices = @transform_3, window_bounds = array<i64: 512, 512>}, {pipeline_mode = #tpu.pipeline_mode<synchronous>, transform_indices = @transform_4, window_bounds = array<i64: 1, 512>}, {pipeline_mode = #tpu.pipeline_mode<synchronous>, transform_indices = @transform_5, window_bounds = array<i64: 512, 512>}, {pipeline_mode = #tpu.pipeline_mode<synchronous>, transform_indices = @transform_6, window_bounds = array<i64: 1, 512>}, {pipeline_mode = #tpu.pipeline_mode<synchronous>, transform_indices = @transform_7, window_bounds = array<i64: 512, 128>}, {pipeline_mode = #tpu.pipeline_mode<synchronous>, transform_indices = @transform_8, window_bounds = array<i64: 1, 128>}, {transform_indices = @transform_9, window_bounds = array<i64: 8, 128>}]} {
    %c0 = arith.constant 0 : index
    %c0_0 = arith.constant 0 : index
    %0 = vector.load %arg1[%c0, %c0_0] : memref<8x10xbf16, #tpu.memory_space<vmem>>, vector<8x10xbf16>
    %c0_1 = arith.constant 0 : index
    %c0_2 = arith.constant 0 : index
    %1 = vector.load %arg2[%c0_1, %c0_2] : memref<10x512xbf16, #tpu.memory_space<vmem>>, vector<10x512xbf16>
    %cst = arith.constant dense<0.000000e+00> : vector<8x512xf32>
    %2 = tpu.matmul %0, %1, %cst {dimension_numbers = #tpu.dot_dimension_numbers<[1], [0], [0], [1], [0, 0, 1, 1], [], []>} : vector<8x10xbf16>, vector<10x512xbf16>, vector<8x512xf32> -> vector<8x512xf32>
    %c0_3 = arith.constant 0 : index
    %c0_4 = arith.constant 0 : index
    %3 = vector.load %arg3[%c0_3, %c0_4] : memref<1x512xf32, #tpu.memory_space<vmem>>, vector<1x512xf32>
    %4 = vector.broadcast %3 : vector<1x512xf32> to vector<8x512xf32>
    %5 = arith.addf %2, %4 : vector<8x512xf32>
    %cst_5 = arith.constant 0.000000e+00 : f32
    %6 = vector.broadcast %cst_5 : f32 to vector<8x512xf32>
    %7 = arith.maximumf %5, %6 : vector<8x512xf32>
    %8 = arith.truncf %7 : vector<8x512xf32> to vector<8x512xbf16>
    %c0_6 = arith.constant 0 : index
    %c0_7 = arith.constant 0 : index
    %9 = vector.load %arg4[%c0_6, %c0_7] : memref<512x512xbf16, #tpu.memory_space<vmem>>, vector<512x512xbf16>
    %cst_8 = arith.constant dense<0.000000e+00> : vector<8x512xf32>
    %10 = tpu.matmul %8, %9, %cst_8 {dimension_numbers = #tpu.dot_dimension_numbers<[1], [0], [0], [1], [0, 0, 1, 1], [], []>} : vector<8x512xbf16>, vector<512x512xbf16>, vector<8x512xf32> -> vector<8x512xf32>
    %c0_9 = arith.constant 0 : index
    %c0_10 = arith.constant 0 : index
    %11 = vector.load %arg5[%c0_9, %c0_10] : memref<1x512xf32, #tpu.memory_space<vmem>>, vector<1x512xf32>
    %12 = vector.broadcast %11 : vector<1x512xf32> to vector<8x512xf32>
    %13 = arith.addf %10, %12 : vector<8x512xf32>
    %cst_11 = arith.constant 0.000000e+00 : f32
    %14 = vector.broadcast %cst_11 : f32 to vector<8x512xf32>
    %15 = arith.maximumf %13, %14 : vector<8x512xf32>
    %16 = arith.truncf %15 : vector<8x512xf32> to vector<8x512xbf16>
    %c0_12 = arith.constant 0 : index
    %c0_13 = arith.constant 0 : index
    %17 = vector.load %arg6[%c0_12, %c0_13] : memref<512x512xbf16, #tpu.memory_space<vmem>>, vector<512x512xbf16>
    %cst_14 = arith.constant dense<0.000000e+00> : vector<8x512xf32>
    %18 = tpu.matmul %16, %17, %cst_14 {dimension_numbers = #tpu.dot_dimension_numbers<[1], [0], [0], [1], [0, 0, 1, 1], [], []>} : vector<8x512xbf16>, vector<512x512xbf16>, vector<8x512xf32> -> vector<8x512xf32>
    %c0_15 = arith.constant 0 : index
    %c0_16 = arith.constant 0 : index
    %19 = vector.load %arg7[%c0_15, %c0_16] : memref<1x512xf32, #tpu.memory_space<vmem>>, vector<1x512xf32>
    %20 = vector.broadcast %19 : vector<1x512xf32> to vector<8x512xf32>
    %21 = arith.addf %18, %20 : vector<8x512xf32>
    %cst_17 = arith.constant 0.000000e+00 : f32
    %22 = vector.broadcast %cst_17 : f32 to vector<8x512xf32>
    %23 = arith.maximumf %21, %22 : vector<8x512xf32>
    %24 = arith.truncf %23 : vector<8x512xf32> to vector<8x512xbf16>
    %c0_18 = arith.constant 0 : index
    %c0_19 = arith.constant 0 : index
    %25 = vector.load %arg8[%c0_18, %c0_19] : memref<512x128xbf16, #tpu.memory_space<vmem>>, vector<512x128xbf16>
    %cst_20 = arith.constant dense<0.000000e+00> : vector<8x128xf32>
    %26 = tpu.matmul %24, %25, %cst_20 {dimension_numbers = #tpu.dot_dimension_numbers<[1], [0], [0], [1], [0, 0, 1, 1], [], []>} : vector<8x512xbf16>, vector<512x128xbf16>, vector<8x128xf32> -> vector<8x128xf32>
    %c0_21 = arith.constant 0 : index
    %c0_22 = arith.constant 0 : index
    %27 = vector.load %arg9[%c0_21, %c0_22] : memref<1x128xf32, #tpu.memory_space<vmem>>, vector<1x128xf32>
    %28 = vector.broadcast %27 : vector<1x128xf32> to vector<8x128xf32>
    %29 = arith.addf %26, %28 : vector<8x128xf32>
    %30 = tpu.iota {dimensions = array<i32: 1>} : vector<8x128xi32>
    %c3_i32 = arith.constant 3 : i32
    %c0_i32 = arith.constant 0 : i32
    %31 = arith.cmpi eq, %c3_i32, %c0_i32 : i32
    %c1_i32 = arith.constant 1 : i32
    %32 = arith.select %31, %c1_i32, %c3_i32 : i32
    %33 = vector.broadcast %32 : i32 to vector<8x128xi32>
    %34 = arith.remsi %30, %33 : vector<8x128xi32>
    %c0_i32_23 = arith.constant 0 : i32
    %35 = vector.broadcast %c0_i32_23 : i32 to vector<8x128xi32>
    %36 = arith.cmpi ne, %34, %35 : vector<8x128xi32>
    %c0_i32_24 = arith.constant 0 : i32
    %37 = vector.broadcast %c0_i32_24 : i32 to vector<8x128xi32>
    %38 = arith.cmpi slt, %34, %37 : vector<8x128xi32>
    %c0_i32_25 = arith.constant 0 : i32
    %39 = arith.cmpi slt, %32, %c0_i32_25 : i32
    %40 = vector.broadcast %39 : i1 to vector<8x128xi1>
    %41 = vector.broadcast %40 : vector<8x128xi1> to vector<8x128xi1>
    %42 = arith.xori %38, %41 : vector<8x128xi1>
    %43 = arith.andi %42, %36 : vector<8x128xi1>
    %44 = vector.broadcast %32 : i32 to vector<8x128xi32>
    %45 = arith.addi %34, %44 : vector<8x128xi32>
    %46 = arith.select %43, %45, %34 : vector<8x128xi1>, vector<8x128xi32>
    %c2_i32 = arith.constant 2 : i32
    %47 = vector.broadcast %c2_i32 : i32 to vector<8x128xi32>
    %48 = arith.cmpi eq, %46, %47 : vector<8x128xi32>
    %49 = arith.negf %29 : vector<8x128xf32>
    %50 = math.exp %49 : vector<8x128xf32>
    %cst_26 = arith.constant 1.000000e+00 : f32
    %51 = vector.broadcast %cst_26 : f32 to vector<8x128xf32>
    %52 = arith.addf %51, %50 : vector<8x128xf32>
    %53 = arith.divf %51, %52 : vector<8x128xf32>
    %54 = arith.select %48, %53, %29 : vector<8x128xi1>, vector<8x128xf32>
    %c0_27 = arith.constant 0 : index
    %c0_28 = arith.constant 0 : index
    %55 = vector.load %arg10[%c0_27, %c0_28] : memref<8x128xf32, #tpu.memory_space<vmem>>, vector<8x128xf32>
    tpu.vector_store %arg10[%c0_27, %c0_28], %54 {strides = array<i32>} : memref<8x128xf32, #tpu.memory_space<vmem>>, vector<8x128xf32>,
    return
  }
  func.func @transform_0(%arg0: i32) -> (i32, i32) {
    %c0_i32 = arith.constant 0 : i32
    %c0_i32_0 = arith.constant 0 : i32
    return %arg0, %c0_i32 : i32, i32
  }
  func.func @transform_1(%arg0: i32) -> (i32, i32) {
    %c0_i32 = arith.constant 0 : i32
    %c0_i32_0 = arith.constant 0 : i32
    %c0_i32_1 = arith.constant 0 : i32
    return %c0_i32, %c0_i32_0 : i32, i32
  }
  func.func @transform_2(%arg0: i32) -> (i32, i32) {
    %c0_i32 = arith.constant 0 : i32
    %c0_i32_0 = arith.constant 0 : i32
    %c0_i32_1 = arith.constant 0 : i32
    return %c0_i32, %c0_i32_0 : i32, i32
  }
  func.func @transform_3(%arg0: i32) -> (i32, i32) {
    %c0_i32 = arith.constant 0 : i32
    %c0_i32_0 = arith.constant 0 : i32
    %c0_i32_1 = arith.constant 0 : i32
    return %c0_i32, %c0_i32_0 : i32, i32
  }
  func.func @transform_4(%arg0: i32) -> (i32, i32) {
    %c0_i32 = arith.constant 0 : i32
    %c0_i32_0 = arith.constant 0 : i32
    %c0_i32_1 = arith.constant 0 : i32
    return %c0_i32, %c0_i32_0 : i32, i32
  }
  func.func @transform_5(%arg0: i32) -> (i32, i32) {
    %c0_i32 = arith.constant 0 : i32
    %c0_i32_0 = arith.constant 0 : i32
    %c0_i32_1 = arith.constant 0 : i32
    return %c0_i32, %c0_i32_0 : i32, i32
  }
  func.func @transform_6(%arg0: i32) -> (i32, i32) {
    %c0_i32 = arith.constant 0 : i32
    %c0_i32_0 = arith.constant 0 : i32
    %c0_i32_1 = arith.constant 0 : i32
    return %c0_i32, %c0_i32_0 : i32, i32
  }
  func.func @transform_7(%arg0: i32) -> (i32, i32) {
    %c0_i32 = arith.constant 0 : i32
    %c0_i32_0 = arith.constant 0 : i32
    %c0_i32_1 = arith.constant 0 : i32
    return %c0_i32, %c0_i32_0 : i32, i32
  }
  func.func @transform_8(%arg0: i32) -> (i32, i32) {
    %c0_i32 = arith.constant 0 : i32
    %c0_i32_0 = arith.constant 0 : i32
    %c0_i32_1 = arith.constant 0 : i32
    return %c0_i32, %c0_i32_0 : i32, i32
  }
  func.func @transform_9(%arg0: i32) -> (i32, i32) {
    %c0_i32 = arith.constant 0 : i32
    %c0_i32_0 = arith.constant 0 : i32
    return %arg0, %c0_i32 : i32, i32
  }
}

</mosaic_0001>

<bundles_post_ra>
// kernel: tpu_custom_call.1
= control target key start
LH: loop header
LB: loop body
LE: loop exit
PB: predicated region body
PF: predicated region fallthrough
CT: control target
= control target key end

     0   :  { %14 = vsyncpa [#allocation3], 0  ;;  %s3655_s0 = inlined_call_operand.hbm [shape: bf16[8,10], index: 0, kind: input, shape index: {}]   ;;  %s3656_s1 = inlined_call_operand.hbm [shape: bf16[10,512], index: 1, kind: input, shape index: {}]   ;;  %s3657_s2 = inlined_call_operand.hbm [shape: f32[1,512], index: 2, kind: input, shape index: {}]   ;;  %s3658_s3 = inlined_call_operand.hbm [shape: bf16[512,512], index: 3, kind: input, shape index: {}]   ;;  %s3659_s4 = inlined_call_operand.vmem [shape: f32[1,512], index: 4, kind: input, shape index: {}]   ;;  %s3660_s5 = inlined_call_operand.hbm [shape: bf16[512,512], index: 5, kind: input, shape index: {}]   ;;  %s3661_s6 = inlined_call_operand.vmem [shape: f32[1,512], index: 6, kind: input, shape index: {}]   ;;  %s3662_s7 = inlined_call_operand.hbm [shape: bf16[512,128], index: 7, kind: input, shape index: {}]   ;;  %s3663_s8 = inlined_call_operand.vmem [shape: f32[1,128], index: 8, kind: input, shape index: {}]   ;;  %s3664_s9 = inlined_call_operand.hbm [shape: f32[8,128], index: 9, kind: output, shape index: {}]  }
   0x1   :  { %15 = vsyncpa [#allocation6], 0 }
   0x2   :  { %16 = vsyncpa [#allocation9], 0 }
   0x3   :  { %17 = vsyncpa [#allocation12], 0 }
   0x4   :  { %18 = vsyncpa [#allocation4], 0  ;;  %s3506_s30 = smov [#allocation5]  }
   0x5   :  { %s34_s10 = sshll.u32 %s3506_s30, 4  ;;  %s35_s10 = int_to_ptr.vmem [resolvable:$true] %s34_s10 }
   0x6   :  { %s3364_s11 = scalar_lea.vmem %s35_s10, 512  ;;  %p3369_p1 = scmp.lt.s32.totalorder %s35_s10, %s35_s10 }
   0x7   :  { %p3365_p0 = scmp.ne.s32.totalorder %s35_s10, %s3364_s11  ;;  %p3370_p2 = scmp.lt.s32.totalorder %s3364_s11, %s3364_s11 }
   0x9   :  { %p3371_p3 = por %p3370_p2, %p3369_p1 }
   0xb   :  { %p3372_p4 = pnand %p3371_p3, %p3365_p0 }
   0xd   :  { %3375 = shalt.err (!%p3372_p4)
}
   0xe   :  { %s3507_s12 = smov 256   ;;  %s3508_s13 = smov 16  }
   0xf   :  { %40 = dma.hbm_to_vmem [thread:$0]  %s3656_s1, 512, %s35_s10, [#allocation6], %s3507_s12, %s3507_s12, %s3508_s13  }
  0x10   :  { %s3509_s16 = smov [#allocation8]   ;;  %s3510_s18 = smov [#allocation2]  }
  0x11   :  { %s56_s17 = sshll.u32 %s3509_s16, 4  ;;  %s25_s19 = sshll.u32 %s3510_s18, 4  ;;  %s57_s17 = int_to_ptr.vmem [resolvable:$true] %s56_s17  ;;  %s26_s19 = int_to_ptr.vmem [resolvable:$true] %s25_s19 }
  0x12   :  { %s3384_s20 = scalar_lea.vmem %s57_s17, 16384  ;;  %p3389_p6 = scmp.lt.s32.totalorder %s57_s17, %s57_s17 }
  0x13   :  { %p3385_p5 = scmp.ne.s32.totalorder %s57_s17, %s3384_s20  ;;  %p3390_p7 = scmp.lt.s32.totalorder %s3384_s20, %s3384_s20 }
  0x15   :  { %p3391_p8 = por %p3390_p7, %p3389_p6 }
  0x17   :  { %p3392_p9 = pnand %p3391_p8, %p3385_p5 }
  0x19   :  { %3395 = shalt.err (!%p3392_p9)
}
  0x1a   :  { %62 = dma.hbm_to_vmem [thread:$0]  %s3658_s3, 16384, %s57_s17, [#allocation9], %s3507_s12, %s3507_s12, %s3508_s13  }
  0x1b   :  { %s3404_s1 = scalar_lea.vmem %s26_s19, 64  ;;  %p3409_p11 = scmp.lt.s32.totalorder %s26_s19, %s26_s19 }
  0x1c   :  { %p3405_p10 = scmp.ne.s32.totalorder %s26_s19, %s3404_s1  ;;  %p3410_p12 = scmp.lt.s32.totalorder %s3404_s1, %s3404_s1 }
  0x1e   :  { %p3411_p13 = por %p3410_p12, %p3409_p11 }
  0x20   :  { %p3412_p0 = pnand %p3411_p13, %p3405_p10 }
  0x22   :  { %3415 = shalt.err (!%p3412_p0)
}
  0x23   :  { %28 = dma.hbm_to_vmem [thread:$0]  %s3655_s0, 64, %s26_s19, [#allocation3]  }
  0x24   :  { %s3511_s25 = smov [#allocation7]   ;;  %s3512_s27 = smov [#allocation10]  }
  0x25   :  { %s47_s26 = sshll.u32 %s3511_s25, 4  ;;  %s70_s28 = sshll.u32 %s3512_s27, 4  ;;  %s48_s26 = int_to_ptr.vmem [resolvable:$true] %s47_s26  ;;  %s71_s28 = int_to_ptr.vmem [resolvable:$true] %s70_s28 }
  0x26   :  { %s3424_s29 = scalar_lea.vmem %s48_s26, 64  ;;  %p3429_p2 = scmp.lt.s32.totalorder %s48_s26, %s48_s26 }
  0x27   :  { %p3425_p1 = scmp.ne.s32.totalorder %s48_s26, %s3424_s29  ;;  %p3430_p3 = scmp.lt.s32.totalorder %s3424_s29, %s3424_s29 }
  0x29   :  { %p3431_p4 = por %p3430_p3, %p3429_p2 }
  0x2b   :  { %p3432_p5 = pnand %p3431_p4, %p3425_p1 }
  0x2d   :  { %3435 = shalt.err (!%p3432_p5)
}
  0x2e   :  { %50 = dma.hbm_to_vmem [thread:$0]  %s3657_s2, 64, %s48_s26, [#allocation6]  }
  0x2f   :  { %s3444_s10 = scalar_lea.vmem %s71_s28, 16384  ;;  %p3449_p7 = scmp.lt.s32.totalorder %s71_s28, %s71_s28 }
  0x30   :  { %p3445_p6 = scmp.ne.s32.totalorder %s71_s28, %s3444_s10  ;;  %p3450_p8 = scmp.lt.s32.totalorder %s3444_s10, %s3444_s10 }
  0x32   :  { %p3451_p9 = por %p3450_p8, %p3449_p7 }
  0x34   :  { %p3452_p10 = pnand %p3451_p9, %p3445_p6 }
  0x36   :  { %3455 = shalt.err (!%p3452_p10)
}
  0x37   :  { %76 = dma.hbm_to_vmem [thread:$0]  %s3660_s5, 16384, %s71_s28, [#allocation9], %s3507_s12, %s3507_s12, %s3508_s13  }
  0x38   :  { %s3513_s14 = smov [#allocation11]  }
  0x39   :  { %s84_s15 = sshll.u32 %s3513_s14, 4  ;;  %s85_s15 = int_to_ptr.vmem [resolvable:$true] %s84_s15 }
  0x3a   :  { %s3464_s16 = scalar_lea.vmem %s85_s15, 4096  ;;  %p3469_p12 = scmp.lt.s32.totalorder %s85_s15, %s85_s15 }
  0x3b   :  { %p3465_p11 = scmp.ne.s32.totalorder %s85_s15, %s3464_s16  ;;  %p3470_p13 = scmp.lt.s32.totalorder %s3464_s16, %s3464_s16 }
  0x3d   :  { %p3471_p0 = por %p3470_p13, %p3469_p12 }
  0x3f   :  { %p3472_p1 = pnand %p3471_p0, %p3465_p11 }
  0x41   :  { %3475 = shalt.err (!%p3472_p1)
}
  0x42   :  { %s3514_s2 = smov 64   ;;  %s3515_s17 = smov 4  }
  0x43   :  { %90 = dma.hbm_to_vmem [thread:$0]  %s3662_s7, 4096, %s85_s15, [#allocation12], %s3514_s2, %s3514_s2, %s3515_s17  }
  0x44   :  { %3496 = dma.done.wait [#allocation3], 64  }
  0x45   :  { %3497 = vsyncadd [#allocation3], 4294967232 }
  0x46   :  { %3498 = dma.done.wait [#allocation6], 576  }
  0x47   :  { %3499 = vsyncadd [#allocation6], 4294966720 }
  0x48   :  { %3500 = dma.done.wait [#allocation9], 32768  }
  0x49   :  { %3501 = vsyncadd [#allocation9], 4294934528 }
  0x4a   :  { %3502 = dma.done.wait [#allocation12], 4096  }
  0x4b   :  { %3503 = vsyncadd [#allocation12], 4294963200  ;;  %v3516_v0 = vmov 0   ;;  %vm159_vm0 = vcmask 1044480   ;;  %v112_v5 = vld [vmem:[#allocation2] sm:$0xf] }
  0x4c   :  { %204 = vmatprep.mubr.bf16.mxu0 %v3516_v0  ;;  %245 = vmatprep.mubr.bf16.mxu1 %v3516_v0  ;;  %v2930_v1 = vld [vmem:[#allocation5 + $0x4] ss:$16 sps:$4 sm:$0x1f]   ;;  %v2932_v2 = vld [vmem:[#allocation5 + $0xc] ss:$16 sps:$4 sm:$0x1f]  }
  0x4d   :  { %2578 = vmatprep.subr.msk.bf16.mxu0 %vm159_vm0, %v2930_v1  ;;  %v2934_v3 = vld [vmem:[#allocation5] ss:$16 sps:$4 sm:$0x1f]   ;;  %v2935_v4 = vld [vmem:[#allocation5 + $0x8] ss:$16 sps:$4 sm:$0x1f]   ;;  %2580 = vmatprep.subr.msk.bf16.mxu1 %vm159_vm0, %v2932_v2 }
  0x4e   :  { %v161_v6 = vsel %vm159_vm0, %v2934_v3, 0  ;;  %v167_v7 = vsel %vm159_vm0, %v2935_v4, 0  ;;  %v2936_v8 = vld [vmem:[#allocation8 + $0xe0] ss:$16 sps:$4 sm:$0xff]   ;;  %v2938_v9 = vld [vmem:[#allocation8 + $0xe4] ss:$16 sps:$4 sm:$0xff]  }
  0x4f   :  { %187 = vmatpush1.bf16.msra.mxu0 %v161_v6  ;;  %228 = vmatpush1.bf16.msra.mxu1 %v167_v7  ;;  %vm155_vm1 = vcmask 80896   ;;  %v2939_v10 = vld [vmem:[#allocation8 + $0x2e0] ss:$16 sps:$4 sm:$0xff]   ;;  %v2941_v11 = vld [vmem:[#allocation8 + $0x2e4] ss:$16 sps:$4 sm:$0xff]  }
  0x50   :  { %1052 = vmatprep.subr.bf16.mxu0 %v2938_v9  ;;  %v2944_v12 = vld [vmem:[#allocation8 + $0xc4] ss:$16 sps:$4 sm:$0xff]   ;;  %v2942_v13 = vld [vmem:[#allocation8 + $0xc0] ss:$16 sps:$4 sm:$0xff]   ;;  %1093 = vmatprep.subr.bf16.mxu1 %v2941_v11  ;;  %v3037_v9 = vld [vmem:[#allocation8 + $0x2ec] ss:$16 sps:$4 sm:$0xff]  }
  0x51   :  { %v2947_v14 = vld [vmem:[#allocation8 + $0x2c4] ss:$16 sps:$4 sm:$0xff]   ;;  %v2945_v15 = vld [vmem:[#allocation8 + $0x2c0] ss:$16 sps:$4 sm:$0xff]  }
  0x52   :  { %2579 = vmatmul.mubr.msk.bf16.vlgmr.msra.gmra.mxu0 %vm155_vm1, %v112_v5  ;;  %2581 = vmatmul.mubr.msk.bf16.vlgmr.msra.gmra.mxu1 %vm155_vm1, %v112_v5  ;;  %v2950_v16 = vld [vmem:[#allocation8 + $0xa4] ss:$16 sps:$4 sm:$0xff]   ;;  %v2948_v18 = vld [vmem:[#allocation8 + $0xa0] ss:$16 sps:$4 sm:$0xff]  }
  0x53   :  { %1053 = vmatpush1.bf16.msra.mxu0 %v2936_v8  ;;  %1094 = vmatpush1.bf16.msra.mxu1 %v2939_v10  ;;  %v2953_v17 = vld [vmem:[#allocation8 + $0x2a4] ss:$16 sps:$4 sm:$0xff]   ;;  %v2951_v19 = vld [vmem:[#allocation8 + $0x2a0] ss:$16 sps:$4 sm:$0xff]   ;;  %v3034_v8 = vld [vmem:[#allocation8 + $0xec] ss:$16 sps:$4 sm:$0xff]   ;;  %v119_v10 = vlaneseq }
  0x54   :  { %1054 = vmatprep.subr.bf16.mxu0 %v2944_v12  ;;  %1095 = vmatprep.subr.bf16.mxu1 %v2947_v14  ;;  %v2956_v20 = vld [vmem:[#allocation8 + $0x84] ss:$16 sps:$4 sm:$0xff]   ;;  %v2954_v22 = vld [vmem:[#allocation8 + $0x80] ss:$16 sps:$4 sm:$0xff]   ;;  %v117_v14 = vld [vmem:[#allocation7] sm:$0xf] }
  0x55   :  { %v2959_v21 = vld [vmem:[#allocation8 + $0x284] ss:$16 sps:$4 sm:$0xff]   ;;  %v2957_v23 = vld [vmem:[#allocation8 + $0x280] ss:$16 sps:$4 sm:$0xff]   ;;  %v120_v11 = vshrl.u32 %v119_v10, 7 }
  0x56   :  { %v2962_v24 = vld [vmem:[#allocation8 + $0x64] ss:$16 sps:$4 sm:$0xff]   ;;  %v2960_v26 = vld [vmem:[#allocation8 + $0x60] ss:$16 sps:$4 sm:$0xff]  }
  0x57   :  { %1055 = vmatpush1.bf16.msra.mxu0 %v2942_v13  ;;  %1096 = vmatpush1.bf16.msra.mxu1 %v2945_v15  ;;  %v2965_v25 = vld [vmem:[#allocation8 + $0x264] ss:$16 sps:$4 sm:$0xff]   ;;  %v2963_v27 = vld [vmem:[#allocation8 + $0x260] ss:$16 sps:$4 sm:$0xff]   ;;  %v3596_v12 = vsub.s32 0, %v120_v11  ;;  %v3598_v13 = vsub.s32 2, %v120_v11 }
  0x58   :  { %1056 = vmatprep.subr.bf16.mxu0 %v2950_v16  ;;  %1097 = vmatprep.subr.bf16.mxu1 %v2953_v17  ;;  %v2968_v28 = vld [vmem:[#allocation8 + $0x44] ss:$16 sps:$4 sm:$0xff]   ;;  %v2966_v30 = vld [vmem:[#allocation8 + $0x40] ss:$16 sps:$4 sm:$0xff]   ;;  %v3600_v15 = vsub.s32 1, %v120_v11  ;;  %v3602_v16 = vsub.s32 3, %v120_v11 }
  0x59   :  { %v2971_v29 = vld [vmem:[#allocation8 + $0x244] ss:$16 sps:$4 sm:$0xff]   ;;  %v2969_v31 = vld [vmem:[#allocation8 + $0x240] ss:$16 sps:$4 sm:$0xff]   ;;  %v122_v17 = vrot.slane %v117_v14, %v3596_v12  ;;  %v3083_v11 = vld [vmem:[#allocation8 + $0x3e8] ss:$16 sps:$4 sm:$0xff]  }
  0x5a   :  { %v2974_v32 = vld [vmem:[#allocation8 + $0x24] ss:$16 sps:$4 sm:$0xff]   ;;  %v2972_v34 = vld [vmem:[#allocation8 + $0x20] ss:$16 sps:$4 sm:$0xff]  }
  0x5b   :  { %1057 = vmatpush1.bf16.msra.mxu0 %v2948_v18  ;;  %1098 = vmatpush1.bf16.msra.mxu1 %v2951_v19  ;;  %v2977_v33 = vld [vmem:[#allocation8 + $0x224] ss:$16 sps:$4 sm:$0xff]   ;;  %v2975_v35 = vld [vmem:[#allocation8 + $0x220] ss:$16 sps:$4 sm:$0xff]   ;;  %v130_v18 = vrot.slane %v117_v14, %v3598_v13  ;;  %v126_v19 = vrot.slane %v117_v14, %v3600_v15 }
  0x5c   :  { %1058 = vmatprep.subr.bf16.mxu0 %v2956_v20  ;;  %1099 = vmatprep.subr.bf16.mxu1 %v2959_v21  ;;  %v2980_v36 = vld [vmem:[#allocation8 + $0x4] ss:$16 sps:$4 sm:$0xff]   ;;  %v2978_v38 = vld [vmem:[#allocation8] ss:$16 sps:$4 sm:$0xff]   ;;  %v134_v20 = vrot.slane %v117_v14, %v3602_v16  ;;  %v3088_v14 = vld [vmem:[#allocation8 + $0x1cc] ss:$16 sps:$4 sm:$0xff]  }
  0x5d   :  { %v2983_v37 = vld [vmem:[#allocation8 + $0x204] ss:$16 sps:$4 sm:$0xff]   ;;  %v2981_v39 = vld [vmem:[#allocation8 + $0x200] ss:$16 sps:$4 sm:$0xff]  }
  0x5e   :  { %v2986_v40 = vld [vmem:[#allocation8 + $0x1e4] ss:$16 sps:$4 sm:$0xff]   ;;  %v2984_v42 = vld [vmem:[#allocation8 + $0x1e0] ss:$16 sps:$4 sm:$0xff]  }
  0x5f   :  { %1059 = vmatpush1.bf16.msra.mxu0 %v2954_v22  ;;  %1100 = vmatpush1.bf16.msra.mxu1 %v2957_v23  ;;  %v2989_v41 = vld [vmem:[#allocation8 + $0x3e4] ss:$16 sps:$4 sm:$0xff]   ;;  %v2987_v43 = vld [vmem:[#allocation8 + $0x3e0] ss:$16 sps:$4 sm:$0xff]  }
  0x60   :  { %1060 = vmatprep.subr.bf16.mxu0 %v2962_v24  ;;  %1101 = vmatprep.subr.bf16.mxu1 %v2965_v25  ;;  %v2992_v44 = vld [vmem:[#allocation8 + $0x1c4] ss:$16 sps:$4 sm:$0xff]   ;;  %v2990_v45 = vld [vmem:[#allocation8 + $0x1c0] ss:$16 sps:$4 sm:$0xff]  }
  0x61   :  { %v2995_v46 = vld [vmem:[#allocation8 + $0x3c4] ss:$16 sps:$4 sm:$0xff]   ;;  %v2993_v47 = vld [vmem:[#allocation8 + $0x3c0] ss:$16 sps:$4 sm:$0xff]  }
  0x62   :  { %v2998_v48 = vld [vmem:[#allocation8 + $0x1a4] ss:$16 sps:$4 sm:$0xff]   ;;  %v2996_v50 = vld [vmem:[#allocation8 + $0x1a0] ss:$16 sps:$4 sm:$0xff]  }
  0x63   :  { %1061 = vmatpush1.bf16.msra.mxu0 %v2960_v26  ;;  %1102 = vmatpush1.bf16.msra.mxu1 %v2963_v27  ;;  %v3001_v49 = vld [vmem:[#allocation8 + $0x3a4] ss:$16 sps:$4 sm:$0xff]   ;;  %v2999_v51 = vld [vmem:[#allocation8 + $0x3a0] ss:$16 sps:$4 sm:$0xff]  }
  0x64   :  { %1062 = vmatprep.subr.bf16.mxu0 %v2968_v28  ;;  %1103 = vmatprep.subr.bf16.mxu1 %v2971_v29  ;;  %v3004_v52 = vld [vmem:[#allocation8 + $0x184] ss:$16 sps:$4 sm:$0xff]   ;;  %v3002_v54 = vld [vmem:[#allocation8 + $0x180] ss:$16 sps:$4 sm:$0xff]  }
  0x65   :  { %v3007_v53 = vld [vmem:[#allocation8 + $0x384] ss:$16 sps:$4 sm:$0xff]   ;;  %v3005_v55 = vld [vmem:[#allocation8 + $0x380] ss:$16 sps:$4 sm:$0xff]  }
  0x66   :  { %v3010_v56 = vld [vmem:[#allocation8 + $0x164] ss:$16 sps:$4 sm:$0xff]   ;;  %v3008_v58 = vld [vmem:[#allocation8 + $0x160] ss:$16 sps:$4 sm:$0xff]  }
  0x67   :  { %1063 = vmatpush1.bf16.msra.mxu0 %v2966_v30  ;;  %1104 = vmatpush1.bf16.msra.mxu1 %v2969_v31  ;;  %v3013_v57 = vld [vmem:[#allocation8 + $0x364] ss:$16 sps:$4 sm:$0xff]   ;;  %v3011_v59 = vld [vmem:[#allocation8 + $0x360] ss:$16 sps:$4 sm:$0xff]  }
  0x68   :  { %1064 = vmatprep.subr.bf16.mxu0 %v2974_v32  ;;  %1105 = vmatprep.subr.bf16.mxu1 %v2977_v33  ;;  %v3016_v60 = vld [vmem:[#allocation8 + $0x144] ss:$16 sps:$4 sm:$0xff]   ;;  %v3014_v62 = vld [vmem:[#allocation8 + $0x140] ss:$16 sps:$4 sm:$0xff]  }
  0x69   :  { %v3019_v61 = vld [vmem:[#allocation8 + $0x344] ss:$16 sps:$4 sm:$0xff]   ;;  %v3017_v63 = vld [vmem:[#allocation8 + $0x340] ss:$16 sps:$4 sm:$0xff]  }
  0x6a   :  { %v3022_v0 = vld [vmem:[#allocation8 + $0x124] ss:$16 sps:$4 sm:$0xff]   ;;  %v3020_v2 = vld [vmem:[#allocation8 + $0x120] ss:$16 sps:$4 sm:$0xff]  }
  0x6b   :  { %1065 = vmatpush1.bf16.msra.mxu0 %v2972_v34  ;;  %1106 = vmatpush1.bf16.msra.mxu1 %v2975_v35  ;;  %v3025_v1 = vld [vmem:[#allocation8 + $0x324] ss:$16 sps:$4 sm:$0xff]   ;;  %v3023_v3 = vld [vmem:[#allocation8 + $0x320] ss:$16 sps:$4 sm:$0xff]  }
  0x6c   :  { %1066 = vmatprep.subr.bf16.mxu0 %v2980_v36  ;;  %1107 = vmatprep.subr.bf16.mxu1 %v2983_v37  ;;  %v3028_v4 = vld [vmem:[#allocation8 + $0x104] ss:$16 sps:$4 sm:$0xff]   ;;  %v3026_v6 = vld [vmem:[#allocation8 + $0x100] ss:$16 sps:$4 sm:$0xff]  }
  0x6d   :  { %v3031_v5 = vld [vmem:[#allocation8 + $0x304] ss:$16 sps:$4 sm:$0xff]   ;;  %v3029_v7 = vld [vmem:[#allocation8 + $0x300] ss:$16 sps:$4 sm:$0xff]  }
  0x6f   :  { %1067 = vmatpush1.bf16.msra.mxu0 %v2978_v38  ;;  %1108 = vmatpush1.bf16.msra.mxu1 %v2981_v39 }
  0x70   :  { %1068 = vmatprep.subr.bf16.mxu0 %v2986_v40  ;;  %1109 = vmatprep.subr.bf16.mxu1 %v2989_v41  ;;  %v3032_v40 = vld [vmem:[#allocation8 + $0xe8] ss:$16 sps:$4 sm:$0xff]  }
  0x71   :  { %v3035_v41 = vld [vmem:[#allocation8 + $0x2e8] ss:$16 sps:$4 sm:$0xff]  }
  0x73   :  { %1069 = vmatpush2.bf16.msra.mxu0 %v2984_v42  ;;  %1110 = vmatpush2.bf16.msra.mxu1 %v2987_v43  ;;  %v3040_v43 = vld [vmem:[#allocation8 + $0xcc] ss:$16 sps:$4 sm:$0xff]  }
  0x74   :  { %1070 = vmatprep.subr.bf16.mxu0 %v2992_v44  ;;  %1111 = vmatprep.subr.bf16.mxu1 %v2995_v46  ;;  %v3043_v44 = vld [vmem:[#allocation8 + $0x2cc] ss:$16 sps:$4 sm:$0xff]   ;;  %v3041_v46 = vld [vmem:[#allocation8 + $0x2c8] ss:$16 sps:$4 sm:$0xff]  }
  0x77   :  { %1071 = vmatpush2.bf16.msra.mxu0 %v2990_v45  ;;  %1112 = vmatpush2.bf16.msra.mxu1 %v2993_v47  ;;  %v3038_v45 = vld [vmem:[#allocation8 + $0xc8] ss:$16 sps:$4 sm:$0xff]   ;;  %v3046_v47 = vld [vmem:[#allocation8 + $0xac] ss:$16 sps:$4 sm:$0xff]  }
  0x78   :  { %1072 = vmatprep.subr.bf16.mxu0 %v2998_v48  ;;  %1113 = vmatprep.subr.bf16.mxu1 %v3001_v49  ;;  %v3049_v48 = vld [vmem:[#allocation8 + $0x2ac] ss:$16 sps:$4 sm:$0xff]   ;;  %v3044_v49 = vld [vmem:[#allocation8 + $0xa8] ss:$16 sps:$4 sm:$0xff]  }
  0x7b   :  { %1073 = vmatpush2.bf16.msra.mxu0 %v2996_v50  ;;  %1114 = vmatpush2.bf16.msra.mxu1 %v2999_v51  ;;  %v3047_v50 = vld [vmem:[#allocation8 + $0x2a8] ss:$16 sps:$4 sm:$0xff]   ;;  %v3052_v51 = vld [vmem:[#allocation8 + $0x8c] ss:$16 sps:$4 sm:$0xff]  }
  0x7c   :  { %1074 = vmatprep.subr.bf16.mxu0 %v3004_v52  ;;  %1115 = vmatprep.subr.bf16.mxu1 %v3007_v53  ;;  %v3055_v52 = vld [vmem:[#allocation8 + $0x28c] ss:$16 sps:$4 sm:$0xff]   ;;  %v3050_v53 = vld [vmem:[#allocation8 + $0x88] ss:$16 sps:$4 sm:$0xff]  }
  0x7f   :  { %1075 = vmatpush2.bf16.msra.mxu0 %v3002_v54  ;;  %1116 = vmatpush2.bf16.msra.mxu1 %v3005_v55  ;;  %v3053_v54 = vld [vmem:[#allocation8 + $0x288] ss:$16 sps:$4 sm:$0xff]   ;;  %v3058_v55 = vld [vmem:[#allocation8 + $0x6c] ss:$16 sps:$4 sm:$0xff]  }
  0x80   :  { %1076 = vmatprep.subr.bf16.mxu0 %v3010_v56  ;;  %1117 = vmatprep.subr.bf16.mxu1 %v3013_v57  ;;  %v3061_v56 = vld [vmem:[#allocation8 + $0x26c] ss:$16 sps:$4 sm:$0xff]   ;;  %v3056_v57 = vld [vmem:[#allocation8 + $0x68] ss:$16 sps:$4 sm:$0xff]  }
  0x83   :  { %1077 = vmatpush2.bf16.msra.mxu0 %v3008_v58  ;;  %1118 = vmatpush2.bf16.msra.mxu1 %v3011_v59  ;;  %v3059_v58 = vld [vmem:[#allocation8 + $0x268] ss:$16 sps:$4 sm:$0xff]   ;;  %v3064_v59 = vld [vmem:[#allocation8 + $0x4c] ss:$16 sps:$4 sm:$0xff]  }
  0x84   :  { %1078 = vmatprep.subr.bf16.mxu0 %v3016_v60  ;;  %1119 = vmatprep.subr.bf16.mxu1 %v3019_v61  ;;  %v3067_v60 = vld [vmem:[#allocation8 + $0x24c] ss:$16 sps:$4 sm:$0xff]   ;;  %v3062_v61 = vld [vmem:[#allocation8 + $0x48] ss:$16 sps:$4 sm:$0xff]  }
  0x87   :  { %1079 = vmatpush2.bf16.msra.mxu0 %v3014_v62  ;;  %1120 = vmatpush2.bf16.msra.mxu1 %v3017_v63  ;;  %v3065_v62 = vld [vmem:[#allocation8 + $0x248] ss:$16 sps:$4 sm:$0xff]   ;;  %v3070_v63 = vld [vmem:[#allocation8 + $0x2c] ss:$16 sps:$4 sm:$0xff]  }
  0x88   :  { %1080 = vmatprep.subr.bf16.mxu0 %v3022_v0  ;;  %1121 = vmatprep.subr.bf16.mxu1 %v3025_v1  ;;  %v3073_v0 = vld [vmem:[#allocation8 + $0x22c] ss:$16 sps:$4 sm:$0xff]   ;;  %v3068_v1 = vld [vmem:[#allocation8 + $0x28] ss:$16 sps:$4 sm:$0xff]  }
  0x8b   :  { %1081 = vmatpush2.bf16.msra.mxu0 %v3020_v2  ;;  %1122 = vmatpush2.bf16.msra.mxu1 %v3023_v3  ;;  %v3071_v2 = vld [vmem:[#allocation8 + $0x228] ss:$16 sps:$4 sm:$0xff]   ;;  %v3076_v3 = vld [vmem:[#allocation8 + $0xc] ss:$16 sps:$4 sm:$0xff]  }
  0x8c   :  { %1082 = vmatprep.subr.bf16.mxu0 %v3028_v4  ;;  %1123 = vmatprep.subr.bf16.mxu1 %v3031_v5  ;;  %v3079_v4 = vld [vmem:[#allocation8 + $0x20c] ss:$16 sps:$4 sm:$0xff]   ;;  %v3074_v5 = vld [vmem:[#allocation8 + $0x8] ss:$16 sps:$4 sm:$0xff]  }
  0x8f   :  { %1083 = vmatpush2.bf16.msra.mxu0 %v3026_v6  ;;  %1124 = vmatpush2.bf16.msra.mxu1 %v3029_v7  ;;  %v3077_v6 = vld [vmem:[#allocation8 + $0x208] ss:$16 sps:$4 sm:$0xff]   ;;  %v3082_v7 = vld [vmem:[#allocation8 + $0x1ec] ss:$16 sps:$4 sm:$0xff]  }
  0x90   :  { %1134 = vmatprep.subr.bf16.mxu0 %v3034_v8  ;;  %1175 = vmatprep.subr.bf16.mxu1 %v3037_v9  ;;  %v3085_v8 = vld [vmem:[#allocation8 + $0x3ec] ss:$16 sps:$4 sm:$0xff]   ;;  %v3080_v9 = vld [vmem:[#allocation8 + $0x1e8] ss:$16 sps:$4 sm:$0xff]  }
 0x112   :  { %v206_v21 = vpop.f32.mrf.mxu0  ;;  %v247_v22 = vpop.f32.mrf.mxu1 }
 0x113   :  { %v207_v23 = vadd.f32 %v206_v21, %v122_v17  ;;  %v248_v24 = vadd.f32 %v247_v22, %v130_v18  ;;  %v3091_v17 = vld [vmem:[#allocation8 + $0x3cc] ss:$16 sps:$4 sm:$0xff]   ;;  %v3086_v18 = vld [vmem:[#allocation8 + $0x1c8] ss:$16 sps:$4 sm:$0xff]  }
 0x114   :  { %v208_v25 = vpop.f32.mrf.mxu0  ;;  %v249_v26 = vpop.f32.mrf.mxu1  ;;  %v3097_v21 = vld [vmem:[#allocation8 + $0x3ac] ss:$16 sps:$4 sm:$0xff]   ;;  %v3092_v22 = vld [vmem:[#allocation8 + $0x1a8] ss:$16 sps:$4 sm:$0xff]  }
 0x115   :  { %v256_v27 = vmax.f32 %v248_v24, 0.0  ;;  %v209_v28 = vadd.f32 %v208_v25, %v126_v19  ;;  %v250_v29 = vadd.f32 %v249_v26, %v134_v20  ;;  %v254_v30 = vmax.f32 %v207_v23, 0.0  ;;  %v3089_v19 = vld [vmem:[#allocation8 + $0x3c8] ss:$16 sps:$4 sm:$0xff]   ;;  %v3094_v20 = vld [vmem:[#allocation8 + $0x1ac] ss:$16 sps:$4 sm:$0xff]  }
 0x116   :  { %v210_v31 = vpop.f32.mrf.mxu0  ;;  %v251_v32 = vpop.f32.mrf.mxu1  ;;  %v3095_v23 = vld [vmem:[#allocation8 + $0x3a8] ss:$16 sps:$4 sm:$0xff]   ;;  %v3100_v24 = vld [vmem:[#allocation8 + $0x18c] ss:$16 sps:$4 sm:$0xff]  }
 0x117   :  { %v255_v33 = vmax.f32 %v209_v28, 0.0  ;;  %v257_v34 = vmax.f32 %v250_v29, 0.0  ;;  %v3608_v35 = vpack.c.bf16 %v256_v27, %v256_v27  ;;  %v3610_v42 = vpack.c.bf16 %v254_v30, %v254_v30  ;;  %v3103_v25 = vld [vmem:[#allocation8 + $0x38c] ss:$16 sps:$4 sm:$0xff]   ;;  %v3098_v26 = vld [vmem:[#allocation8 + $0x188] ss:$16 sps:$4 sm:$0xff]  }
 0x118   :  { %v211_v36 = vpop.f32.mrf.mxu0  ;;  %v252_v37 = vpop.f32.mrf.mxu1  ;;  %v3101_v27 = vld [vmem:[#allocation8 + $0x388] ss:$16 sps:$4 sm:$0xff]   ;;  %v3106_v28 = vld [vmem:[#allocation8 + $0x16c] ss:$16 sps:$4 sm:$0xff]  }
 0x119   :  { %v259_v38 = vpack.c.bf16 %v255_v33, %v255_v33  ;;  %v261_v39 = vpack.c.bf16 %v257_v34, %v257_v34  ;;  %v3109_v29 = vld [vmem:[#allocation8 + $0x36c] ss:$16 sps:$4 sm:$0xff]   ;;  %v3104_v30 = vld [vmem:[#allocation8 + $0x168] ss:$16 sps:$4 sm:$0xff]  }
 0x11a   :  { %v3107_v31 = vld [vmem:[#allocation8 + $0x368] ss:$16 sps:$4 sm:$0xff]   ;;  %v3112_v32 = vld [vmem:[#allocation8 + $0x14c] ss:$16 sps:$4 sm:$0xff]  }
 0x11b   :  { %1084 = vmatprep.mubr.bf16.mxu0 %v259_v38  ;;  %1125 = vmatprep.mubr.bf16.mxu1 %v261_v39  ;;  %v3115_v33 = vld [vmem:[#allocation8 + $0x34c] ss:$16 sps:$4 sm:$0xff]   ;;  %v3110_v34 = vld [vmem:[#allocation8 + $0x148] ss:$16 sps:$4 sm:$0xff]  }
 0x11c   :  { %1085 = vmatmul.mubr.bf16.vlgmr.msra.gmra.mxu0 %v3610_v42  ;;  %1126 = vmatmul.mubr.bf16.vlgmr.msra.gmra.mxu1 %v3608_v35  ;;  %v3113_v36 = vld [vmem:[#allocation8 + $0x348] ss:$16 sps:$4 sm:$0xff]   ;;  %v3118_v37 = vld [vmem:[#allocation8 + $0x12c] ss:$16 sps:$4 sm:$0xff]  }
 0x11d   :  { %1135 = vmatpush1.bf16.msra.mxu0 %v3032_v40  ;;  %1176 = vmatpush1.bf16.msra.mxu1 %v3035_v41  ;;  %v3119_v40 = vld [vmem:[#allocation8 + $0x328] ss:$16 sps:$4 sm:$0xff]   ;;  %v3124_v41 = vld [vmem:[#allocation8 + $0x10c] ss:$16 sps:$4 sm:$0xff]  }
 0x11e   :  { %1166 = vmatprep.mubr.bf16.mxu0 %v259_v38  ;;  %1207 = vmatprep.mubr.bf16.mxu1 %v261_v39  ;;  %v3121_v38 = vld [vmem:[#allocation8 + $0x32c] ss:$16 sps:$4 sm:$0xff]   ;;  %v3116_v39 = vld [vmem:[#allocation8 + $0x128] ss:$16 sps:$4 sm:$0xff]  }
 0x11f   :  { %1136 = vmatprep.subr.bf16.mxu0 %v3040_v43  ;;  %1177 = vmatprep.subr.bf16.mxu1 %v3043_v44  ;;  %v3127_v43 = vld [vmem:[#allocation8 + $0x30c] ss:$16 sps:$4 sm:$0xff]   ;;  %v3122_v44 = vld [vmem:[#allocation8 + $0x108] ss:$16 sps:$4 sm:$0xff]  }
 0x121   :  { %1137 = vmatpush1.bf16.msra.mxu0 %v3038_v45  ;;  %1178 = vmatpush1.bf16.msra.mxu1 %v3041_v46  ;;  %v3125_v45 = vld [vmem:[#allocation8 + $0x308] ss:$16 sps:$4 sm:$0xff]   ;;  %v3130_v46 = vld [vmem:[#allocation10 + $0xe4] ss:$16 sps:$4 sm:$0xff]  }
 0x122   :  { %1138 = vmatprep.subr.bf16.mxu0 %v3046_v47  ;;  %1179 = vmatprep.subr.bf16.mxu1 %v3049_v48  ;;  %v3128_v47 = vld [vmem:[#allocation10 + $0xe0] ss:$16 sps:$4 sm:$0xff]   ;;  %v3133_v48 = vld [vmem:[#allocation10 + $0xc4] ss:$16 sps:$4 sm:$0xff]  }
 0x125   :  { %1139 = vmatpush1.bf16.msra.mxu0 %v3044_v49  ;;  %1180 = vmatpush1.bf16.msra.mxu1 %v3047_v50  ;;  %v3131_v49 = vld [vmem:[#allocation10 + $0xc0] ss:$16 sps:$4 sm:$0xff]   ;;  %v3136_v50 = vld [vmem:[#allocation10 + $0xa4] ss:$16 sps:$4 sm:$0xff]  }
 0x126   :  { %1140 = vmatprep.subr.bf16.mxu0 %v3052_v51  ;;  %1181 = vmatprep.subr.bf16.mxu1 %v3055_v52  ;;  %v3134_v51 = vld [vmem:[#allocation10 + $0xa0] ss:$16 sps:$4 sm:$0xff]   ;;  %v3139_v52 = vld [vmem:[#allocation10 + $0x84] ss:$16 sps:$4 sm:$0xff]  }
 0x129   :  { %1141 = vmatpush1.bf16.msra.mxu0 %v3050_v53  ;;  %1182 = vmatpush1.bf16.msra.mxu1 %v3053_v54  ;;  %v3137_v53 = vld [vmem:[#allocation10 + $0x80] ss:$16 sps:$4 sm:$0xff]  }
 0x12a   :  { %1142 = vmatprep.subr.bf16.mxu0 %v3058_v55  ;;  %1183 = vmatprep.subr.bf16.mxu1 %v3061_v56  ;;  %v3176_v54 = vld [vmem:[#allocation10 + $0x2e0] ss:$16 sps:$4 sm:$0xff]   ;;  %v3178_v55 = vld [vmem:[#allocation10 + $0x2e4] ss:$16 sps:$4 sm:$0xff]  }
 0x12b   :  { %v3142_v56 = vld [vmem:[#allocation10 + $0x64] ss:$16 sps:$4 sm:$0xff]  }
 0x12d   :  { %1143 = vmatpush1.bf16.msra.mxu0 %v3056_v57  ;;  %1184 = vmatpush1.bf16.msra.mxu1 %v3059_v58  ;;  %v3182_v57 = vld [vmem:[#allocation10 + $0x2c0] ss:$16 sps:$4 sm:$0xff]   ;;  %v3145_v58 = vld [vmem:[#allocation10 + $0x44] ss:$16 sps:$4 sm:$0xff]  }
 0x12e   :  { %1144 = vmatprep.subr.bf16.mxu0 %v3064_v59  ;;  %1185 = vmatprep.subr.bf16.mxu1 %v3067_v60  ;;  %v3143_v59 = vld [vmem:[#allocation10 + $0x40] ss:$16 sps:$4 sm:$0xff]  }
 0x12f   :  { %v3188_v60 = vld [vmem:[#allocation10 + $0x2a0] ss:$16 sps:$4 sm:$0xff]  }
 0x131   :  { %1145 = vmatpush1.bf16.msra.mxu0 %v3062_v61  ;;  %1186 = vmatpush1.bf16.msra.mxu1 %v3065_v62  ;;  %v3190_v61 = vld [vmem:[#allocation10 + $0x2a4] ss:$16 sps:$4 sm:$0xff]  }
 0x132   :  { %1146 = vmatprep.subr.bf16.mxu0 %v3070_v63  ;;  %1187 = vmatprep.subr.bf16.mxu1 %v3073_v0  ;;  %v3148_v62 = vld [vmem:[#allocation10 + $0x24] ss:$16 sps:$4 sm:$0xff]   ;;  %v3146_v63 = vld [vmem:[#allocation10 + $0x20] ss:$16 sps:$4 sm:$0xff]  }
 0x133   :  { %v3194_v0 = vld [vmem:[#allocation10 + $0x280] ss:$16 sps:$4 sm:$0xff]  }
 0x135   :  { %1147 = vmatpush1.bf16.msra.mxu0 %v3068_v1  ;;  %1188 = vmatpush1.bf16.msra.mxu1 %v3071_v2  ;;  %v3196_v1 = vld [vmem:[#allocation10 + $0x284] ss:$16 sps:$4 sm:$0xff]  }
 0x136   :  { %1148 = vmatprep.subr.bf16.mxu0 %v3076_v3  ;;  %1189 = vmatprep.subr.bf16.mxu1 %v3079_v4  ;;  %v3151_v2 = vld [vmem:[#allocation10 + $0x4] ss:$16 sps:$4 sm:$0xff]   ;;  %v3149_v3 = vld [vmem:[#allocation10] ss:$16 sps:$4 sm:$0xff]  }
 0x137   :  { %v3200_v4 = vld [vmem:[#allocation10 + $0x260] ss:$16 sps:$4 sm:$0xff]  }
 0x139   :  { %1149 = vmatpush1.bf16.msra.mxu0 %v3074_v5  ;;  %1190 = vmatpush1.bf16.msra.mxu1 %v3077_v6  ;;  %v3202_v5 = vld [vmem:[#allocation10 + $0x264] ss:$16 sps:$4 sm:$0xff]  }
 0x13a   :  { %1150 = vmatprep.subr.bf16.mxu0 %v3082_v7  ;;  %1191 = vmatprep.subr.bf16.mxu1 %v3085_v8  ;;  %v3154_v6 = vld [vmem:[#allocation10 + $0x1e4] ss:$16 sps:$4 sm:$0xff]   ;;  %v3152_v7 = vld [vmem:[#allocation10 + $0x1e0] ss:$16 sps:$4 sm:$0xff]  }
 0x13b   :  { %v3206_v8 = vld [vmem:[#allocation10 + $0x240] ss:$16 sps:$4 sm:$0xff]  }
 0x13d   :  { %1151 = vmatpush2.bf16.msra.mxu0 %v3080_v9  ;;  %1192 = vmatpush2.bf16.msra.mxu1 %v3083_v11  ;;  %v3208_v9 = vld [vmem:[#allocation10 + $0x244] ss:$16 sps:$4 sm:$0xff]  }
 0x13e   :  { %1152 = vmatprep.subr.bf16.mxu0 %v3088_v14  ;;  %1193 = vmatprep.subr.bf16.mxu1 %v3091_v17  ;;  %v3157_v11 = vld [vmem:[#allocation10 + $0x1c4] ss:$16 sps:$4 sm:$0xff]   ;;  %v3155_v14 = vld [vmem:[#allocation10 + $0x1c0] ss:$16 sps:$4 sm:$0xff]  }
 0x13f   :  { %v3212_v17 = vld [vmem:[#allocation10 + $0x220] ss:$16 sps:$4 sm:$0xff]  }
 0x141   :  { %1153 = vmatpush2.bf16.msra.mxu0 %v3086_v18  ;;  %1194 = vmatpush2.bf16.msra.mxu1 %v3089_v19  ;;  %v3214_v18 = vld [vmem:[#allocation10 + $0x224] ss:$16 sps:$4 sm:$0xff]  }
 0x142   :  { %1154 = vmatprep.subr.bf16.mxu0 %v3094_v20  ;;  %1195 = vmatprep.subr.bf16.mxu1 %v3097_v21  ;;  %v3160_v19 = vld [vmem:[#allocation10 + $0x1a4] ss:$16 sps:$4 sm:$0xff]   ;;  %v3158_v20 = vld [vmem:[#allocation10 + $0x1a0] ss:$16 sps:$4 sm:$0xff]  }
 0x143   :  { %v3218_v21 = vld [vmem:[#allocation10 + $0x200] ss:$16 sps:$4 sm:$0xff]  }
 0x145   :  { %1155 = vmatpush2.bf16.msra.mxu0 %v3092_v22  ;;  %1196 = vmatpush2.bf16.msra.mxu1 %v3095_v23  ;;  %v3220_v22 = vld [vmem:[#allocation10 + $0x204] ss:$16 sps:$4 sm:$0xff]  }
 0x146   :  { %1156 = vmatprep.subr.bf16.mxu0 %v3100_v24  ;;  %1197 = vmatprep.subr.bf16.mxu1 %v3103_v25  ;;  %v3163_v23 = vld [vmem:[#allocation10 + $0x184] ss:$16 sps:$4 sm:$0xff]   ;;  %v3161_v24 = vld [vmem:[#allocation10 + $0x180] ss:$16 sps:$4 sm:$0xff]  }
 0x147   :  { %v3224_v25 = vld [vmem:[#allocation10 + $0x3e0] ss:$16 sps:$4 sm:$0xff]  }
 0x149   :  { %1157 = vmatpush2.bf16.msra.mxu0 %v3098_v26  ;;  %1198 = vmatpush2.bf16.msra.mxu1 %v3101_v27  ;;  %v3226_v26 = vld [vmem:[#allocation10 + $0x3e4] ss:$16 sps:$4 sm:$0xff]  }
 0x14a   :  { %1158 = vmatprep.subr.bf16.mxu0 %v3106_v28  ;;  %1199 = vmatprep.subr.bf16.mxu1 %v3109_v29  ;;  %v3166_v27 = vld [vmem:[#allocation10 + $0x164] ss:$16 sps:$4 sm:$0xff]   ;;  %v3164_v28 = vld [vmem:[#allocation10 + $0x160] ss:$16 sps:$4 sm:$0xff]  }
 0x14b   :  { %v3230_v29 = vld [vmem:[#allocation10 + $0x3c0] ss:$16 sps:$4 sm:$0xff]  }
 0x14d   :  { %1159 = vmatpush2.bf16.msra.mxu0 %v3104_v30  ;;  %1200 = vmatpush2.bf16.msra.mxu1 %v3107_v31  ;;  %v3232_v30 = vld [vmem:[#allocation10 + $0x3c4] ss:$16 sps:$4 sm:$0xff]  }
 0x14e   :  { %1160 = vmatprep.subr.bf16.mxu0 %v3112_v32  ;;  %1201 = vmatprep.subr.bf16.mxu1 %v3115_v33  ;;  %v3169_v31 = vld [vmem:[#allocation10 + $0x144] ss:$16 sps:$4 sm:$0xff]   ;;  %v3167_v32 = vld [vmem:[#allocation10 + $0x140] ss:$16 sps:$4 sm:$0xff]  }
 0x14f   :  { %v3236_v33 = vld [vmem:[#allocation10 + $0x3a0] ss:$16 sps:$4 sm:$0xff]  }
 0x151   :  { %1161 = vmatpush2.bf16.msra.mxu0 %v3110_v34  ;;  %1202 = vmatpush2.bf16.msra.mxu1 %v3113_v36  ;;  %v3238_v34 = vld [vmem:[#allocation10 + $0x3a4] ss:$16 sps:$4 sm:$0xff]  }
 0x152   :  { %1162 = vmatprep.subr.bf16.mxu0 %v3118_v37  ;;  %1203 = vmatprep.subr.bf16.mxu1 %v3121_v38  ;;  %v3172_v36 = vld [vmem:[#allocation10 + $0x124] ss:$16 sps:$4 sm:$0xff]   ;;  %v3170_v37 = vld [vmem:[#allocation10 + $0x120] ss:$16 sps:$4 sm:$0xff]  }
 0x153   :  { %v3242_v38 = vld [vmem:[#allocation10 + $0x380] ss:$16 sps:$4 sm:$0xff]  }
 0x155   :  { %1163 = vmatpush2.bf16.msra.mxu0 %v3116_v39  ;;  %1204 = vmatpush2.bf16.msra.mxu1 %v3119_v40  ;;  %v3244_v39 = vld [vmem:[#allocation10 + $0x384] ss:$16 sps:$4 sm:$0xff]  }
 0x156   :  { %1164 = vmatprep.subr.bf16.mxu0 %v3124_v41  ;;  %1205 = vmatprep.subr.bf16.mxu1 %v3127_v43  ;;  %v3175_v40 = vld [vmem:[#allocation10 + $0x104] ss:$16 sps:$4 sm:$0xff]   ;;  %v3173_v41 = vld [vmem:[#allocation10 + $0x100] ss:$16 sps:$4 sm:$0xff]  }
 0x157   :  { %v3248_v43 = vld [vmem:[#allocation10 + $0x360] ss:$16 sps:$4 sm:$0xff]  }
 0x159   :  { %1165 = vmatpush2.bf16.msra.mxu0 %v3122_v44  ;;  %1206 = vmatpush2.bf16.msra.mxu1 %v3125_v45  ;;  %v3250_v44 = vld [vmem:[#allocation10 + $0x364] ss:$16 sps:$4 sm:$0xff]   ;;  %v3181_v45 = vld [vmem:[#allocation10 + $0xec] ss:$16 sps:$4 sm:$0xff]  }
 0x15a   :  { %2014 = vmatprep.subr.bf16.mxu0 %v3130_v46  ;;  %2055 = vmatprep.subr.bf16.mxu1 %v3178_v55  ;;  %v3254_v46 = vld [vmem:[#allocation10 + $0x340] ss:$16 sps:$4 sm:$0xff]  }
 0x15c   :  { %1167 = vmatmul.mubr.bf16.vlgmr.msra.gmra.mxu0 %v3610_v42  ;;  %1208 = vmatmul.mubr.bf16.vlgmr.msra.gmra.mxu1 %v3608_v35  ;;  %v3140_v42 = vld [vmem:[#allocation10 + $0x60] ss:$16 sps:$4 sm:$0xff]   ;;  %v3184_v35 = vld [vmem:[#allocation10 + $0x2c4] ss:$16 sps:$4 sm:$0xff]  }
 0x15d   :  { %2015 = vmatpush1.bf16.msra.mxu0 %v3128_v47  ;;  %2056 = vmatpush1.bf16.msra.mxu1 %v3176_v54  ;;  %v3256_v47 = vld [vmem:[#allocation10 + $0x344] ss:$16 sps:$4 sm:$0xff]  }
 0x15e   :  { %2016 = vmatprep.subr.bf16.mxu0 %v3133_v48  ;;  %2057 = vmatprep.subr.bf16.mxu1 %v3184_v35  ;;  %v3262_v48 = vld [vmem:[#allocation10 + $0x324] ss:$16 sps:$4 sm:$0xff]  }
 0x161   :  { %2017 = vmatpush1.bf16.msra.mxu0 %v3131_v49  ;;  %2058 = vmatpush1.bf16.msra.mxu1 %v3182_v57  ;;  %v3260_v49 = vld [vmem:[#allocation10 + $0x320] ss:$16 sps:$4 sm:$0xff]  }
 0x162   :  { %2018 = vmatprep.subr.bf16.mxu0 %v3136_v50  ;;  %2059 = vmatprep.subr.bf16.mxu1 %v3190_v61  ;;  %v3268_v50 = vld [vmem:[#allocation10 + $0x304] ss:$16 sps:$4 sm:$0xff]  }
 0x165   :  { %2019 = vmatpush1.bf16.msra.mxu0 %v3134_v51  ;;  %2060 = vmatpush1.bf16.msra.mxu1 %v3188_v60  ;;  %v3266_v51 = vld [vmem:[#allocation10 + $0x300] ss:$16 sps:$4 sm:$0xff]  }
 0x166   :  { %2020 = vmatprep.subr.bf16.mxu0 %v3139_v52  ;;  %2061 = vmatprep.subr.bf16.mxu1 %v3196_v1  ;;  %v3274_v52 = vld [vmem:[#allocation10 + $0x2ec] ss:$16 sps:$4 sm:$0xff]  }
 0x169   :  { %2021 = vmatpush1.bf16.msra.mxu0 %v3137_v53  ;;  %2062 = vmatpush1.bf16.msra.mxu1 %v3194_v0  ;;  %v3619_v53 = vld [vmem:[%s3659_s4] sm:$0xf] }
 0x16a   :  { %2022 = vmatprep.subr.bf16.mxu0 %v3142_v56  ;;  %2063 = vmatprep.subr.bf16.mxu1 %v3202_v5  ;;  %v395_v54 = vrot.slane %v3619_v53, %v3596_v12  ;;  %v399_v55 = vrot.slane %v3619_v53, %v3600_v15  ;;  %v3179_v5 = vld [vmem:[#allocation10 + $0xe8] ss:$16 sps:$4 sm:$0xff]  }
 0x16d   :  { %2023 = vmatpush1.bf16.msra.mxu0 %v3140_v42  ;;  %2064 = vmatpush1.bf16.msra.mxu1 %v3200_v4 }
 0x16e   :  { %2024 = vmatprep.subr.bf16.mxu0 %v3145_v58  ;;  %2065 = vmatprep.subr.bf16.mxu1 %v3208_v9  ;;  %v3193_v9 = vld [vmem:[#allocation10 + $0xac] ss:$16 sps:$4 sm:$0xff]  }
 0x171   :  { %2025 = vmatpush1.bf16.msra.mxu0 %v3143_v59  ;;  %2066 = vmatpush1.bf16.msra.mxu1 %v3206_v8  ;;  %v3185_v8 = vld [vmem:[#allocation10 + $0xc8] ss:$16 sps:$4 sm:$0xff]  }
 0x172   :  { %2026 = vmatprep.subr.bf16.mxu0 %v3148_v62  ;;  %2067 = vmatprep.subr.bf16.mxu1 %v3214_v18  ;;  %v3205_v18 = vld [vmem:[#allocation10 + $0x6c] ss:$16 sps:$4 sm:$0xff]  }
 0x175   :  { %2027 = vmatpush1.bf16.msra.mxu0 %v3146_v63  ;;  %2068 = vmatpush1.bf16.msra.mxu1 %v3212_v17  ;;  %v3197_v17 = vld [vmem:[#allocation10 + $0x88] ss:$16 sps:$4 sm:$0xff]  }
 0x176   :  { %2028 = vmatprep.subr.bf16.mxu0 %v3151_v2  ;;  %2069 = vmatprep.subr.bf16.mxu1 %v3220_v22  ;;  %v3217_v22 = vld [vmem:[#allocation10 + $0x2c] ss:$16 sps:$4 sm:$0xff]  }
 0x179   :  { %2029 = vmatpush1.bf16.msra.mxu0 %v3149_v3  ;;  %2070 = vmatpush1.bf16.msra.mxu1 %v3218_v21  ;;  %v3209_v21 = vld [vmem:[#allocation10 + $0x48] ss:$16 sps:$4 sm:$0xff]  }
 0x17a   :  { %2030 = vmatprep.subr.bf16.mxu0 %v3154_v6  ;;  %2071 = vmatprep.subr.bf16.mxu1 %v3226_v26  ;;  %v3229_v26 = vld [vmem:[#allocation10 + $0x1ec] ss:$16 sps:$4 sm:$0xff]  }
 0x17d   :  { %2031 = vmatpush2.bf16.msra.mxu0 %v3152_v7  ;;  %2072 = vmatpush2.bf16.msra.mxu1 %v3224_v25  ;;  %v3187_v7 = vld [vmem:[#allocation10 + $0xcc] ss:$16 sps:$4 sm:$0xff]   ;;  %v3221_v25 = vld [vmem:[#allocation10 + $0x8] ss:$16 sps:$4 sm:$0xff]  }
 0x17e   :  { %2032 = vmatprep.subr.bf16.mxu0 %v3157_v11  ;;  %2073 = vmatprep.subr.bf16.mxu1 %v3232_v30  ;;  %v3191_v11 = vld [vmem:[#allocation10 + $0xa8] ss:$16 sps:$4 sm:$0xff]   ;;  %v3241_v30 = vld [vmem:[#allocation10 + $0x1ac] ss:$16 sps:$4 sm:$0xff]  }
 0x181   :  { %2033 = vmatpush2.bf16.msra.mxu0 %v3155_v14  ;;  %2074 = vmatpush2.bf16.msra.mxu1 %v3230_v29  ;;  %v3199_v14 = vld [vmem:[#allocation10 + $0x8c] ss:$16 sps:$4 sm:$0xff]   ;;  %v3233_v29 = vld [vmem:[#allocation10 + $0x1c8] ss:$16 sps:$4 sm:$0xff]  }
 0x182   :  { %2034 = vmatprep.subr.bf16.mxu0 %v3160_v19  ;;  %2075 = vmatprep.subr.bf16.mxu1 %v3238_v34  ;;  %v3203_v19 = vld [vmem:[#allocation10 + $0x68] ss:$16 sps:$4 sm:$0xff]   ;;  %v3253_v34 = vld [vmem:[#allocation10 + $0x16c] ss:$16 sps:$4 sm:$0xff]  }
 0x185   :  { %2035 = vmatpush2.bf16.msra.mxu0 %v3158_v20  ;;  %2076 = vmatpush2.bf16.msra.mxu1 %v3236_v33  ;;  %v3211_v20 = vld [vmem:[#allocation10 + $0x4c] ss:$16 sps:$4 sm:$0xff]   ;;  %v3245_v33 = vld [vmem:[#allocation10 + $0x188] ss:$16 sps:$4 sm:$0xff]  }
 0x186   :  { %2036 = vmatprep.subr.bf16.mxu0 %v3163_v23  ;;  %2077 = vmatprep.subr.bf16.mxu1 %v3244_v39  ;;  %v3215_v23 = vld [vmem:[#allocation10 + $0x28] ss:$16 sps:$4 sm:$0xff]  }
 0x187   :  { %v3257_v39 = vld [vmem:[#allocation10 + $0x148] ss:$16 sps:$4 sm:$0xff]  }
 0x189   :  { %2037 = vmatpush2.bf16.msra.mxu0 %v3161_v24  ;;  %2078 = vmatpush2.bf16.msra.mxu1 %v3242_v38  ;;  %v3223_v24 = vld [vmem:[#allocation10 + $0xc] ss:$16 sps:$4 sm:$0xff]   ;;  %v403_v38 = vrot.slane %v3619_v53, %v3598_v13 }
 0x18a   :  { %2038 = vmatprep.subr.bf16.mxu0 %v3166_v27  ;;  %2079 = vmatprep.subr.bf16.mxu1 %v3250_v44  ;;  %v3227_v27 = vld [vmem:[#allocation10 + $0x1e8] ss:$16 sps:$4 sm:$0xff]  }
 0x18d   :  { %2039 = vmatpush2.bf16.msra.mxu0 %v3164_v28  ;;  %2080 = vmatpush2.bf16.msra.mxu1 %v3248_v43  ;;  %v3235_v28 = vld [vmem:[#allocation10 + $0x1cc] ss:$16 sps:$4 sm:$0xff]  }
 0x18e   :  { %2040 = vmatprep.subr.bf16.mxu0 %v3169_v31  ;;  %2081 = vmatprep.subr.bf16.mxu1 %v3256_v47  ;;  %v3239_v31 = vld [vmem:[#allocation10 + $0x1a8] ss:$16 sps:$4 sm:$0xff]  }
 0x191   :  { %2041 = vmatpush2.bf16.msra.mxu0 %v3167_v32  ;;  %2082 = vmatpush2.bf16.msra.mxu1 %v3254_v46  ;;  %v3247_v32 = vld [vmem:[#allocation10 + $0x18c] ss:$16 sps:$4 sm:$0xff]   ;;  %v3263_v46 = vld [vmem:[#allocation10 + $0x128] ss:$16 sps:$4 sm:$0xff]  }
 0x192   :  { %2042 = vmatprep.subr.bf16.mxu0 %v3172_v36  ;;  %2083 = vmatprep.subr.bf16.mxu1 %v3262_v48  ;;  %v3251_v36 = vld [vmem:[#allocation10 + $0x168] ss:$16 sps:$4 sm:$0xff]  }
 0x195   :  { %2043 = vmatpush2.bf16.msra.mxu0 %v3170_v37  ;;  %2084 = vmatpush2.bf16.msra.mxu1 %v3260_v49  ;;  %v3259_v37 = vld [vmem:[#allocation10 + $0x14c] ss:$16 sps:$4 sm:$0xff]  }
 0x196   :  { %2044 = vmatprep.subr.bf16.mxu0 %v3175_v40  ;;  %2085 = vmatprep.subr.bf16.mxu1 %v3268_v50  ;;  %v3265_v40 = vld [vmem:[#allocation10 + $0x12c] ss:$16 sps:$4 sm:$0xff]  }
 0x197   :  { %v3271_v49 = vld [vmem:[#allocation10 + $0x10c] ss:$16 sps:$4 sm:$0xff]  }
 0x199   :  { %2045 = vmatpush2.bf16.msra.mxu0 %v3173_v41  ;;  %2086 = vmatpush2.bf16.msra.mxu1 %v3266_v51  ;;  %v407_v41 = vrot.slane %v3619_v53, %v3602_v16 }
 0x19a   :  { %2096 = vmatprep.subr.bf16.mxu0 %v3181_v45  ;;  %2137 = vmatprep.subr.bf16.mxu1 %v3274_v52 }
 0x1dc   :  { %v1086_v56 = vpop.f32.mrf.mxu0  ;;  %v1127_v42 = vpop.f32.mrf.mxu1 }
 0x1dd   :  { %v1087_v57 = vadd.f32 %v1086_v56, %v395_v54  ;;  %v3269_v56 = vld [vmem:[#allocation10 + $0x108] ss:$16 sps:$4 sm:$0xff]  }
 0x1de   :  { %v1088_v35 = vpop.f32.mrf.mxu0  ;;  %v1129_v58 = vpop.f32.mrf.mxu1 }
 0x1df   :  { %v1128_v59 = vadd.f32 %v1127_v42, %v1087_v57  ;;  %v1089_v60 = vadd.f32 %v1088_v35, %v399_v55 }
 0x1e0   :  { %v1090_v61 = vpop.f32.mrf.mxu0  ;;  %v1131_v62 = vpop.f32.mrf.mxu1 }
 0x1e1   :  { %v1130_v63 = vadd.f32 %v1129_v58, %v1089_v60  ;;  %v1216_v0 = vmax.f32 %v1128_v59, 0.0  ;;  %v3272_v59 = vld [vmem:[#allocation10 + $0x2e8] ss:$16 sps:$4 sm:$0xff]   ;;  %v3277_v61 = vld [vmem:[#allocation10 + $0x2cc] ss:$16 sps:$4 sm:$0xff]  }
 0x1e2   :  { %v1091_v1 = vpop.f32.mrf.mxu0  ;;  %v1132_v2 = vpop.f32.mrf.mxu1  ;;  %v3275_v62 = vld [vmem:[#allocation10 + $0x2c8] ss:$16 sps:$4 sm:$0xff]  }
 0x1e3   :  { %v1217_v3 = vmax.f32 %v1130_v63, 0.0  ;;  %v3625_v6 = vpack.c.bf16 %v1216_v0, %v1216_v0  ;;  %v3280_v63 = vld [vmem:[#allocation10 + $0x2ac] ss:$16 sps:$4 sm:$0xff]   ;;  %v3278_v0 = vld [vmem:[#allocation10 + $0x2a8] ss:$16 sps:$4 sm:$0xff]  }
 0x1e4   :  { %v3283_v1 = vld [vmem:[#allocation10 + $0x28c] ss:$16 sps:$4 sm:$0xff]  }
 0x1e5   :  { %v1221_v4 = vpack.c.bf16 %v1217_v3, %v1217_v3  ;;  %v3320_v2 = vld [vmem:[#allocation11 + $0x78] sm:$0xff]  }
 0x1e6   :  { %v3321_v3 = vld [vmem:[#allocation11 + $0x38] sm:$0xff]  }
 0x1e7   :  { %2046 = vmatprep.mubr.bf16.mxu0 %v1221_v4 }
 0x1e8   :  { %2047 = vmatmul.mubr.bf16.vlgmr.msra.gmra.mxu0 %v3625_v6 }
 0x1e9   :  { %2097 = vmatpush1.bf16.msra.mxu0 %v3179_v5  ;;  %2128 = vmatprep.mubr.bf16.mxu0 %v1221_v4  ;;  %v3322_v4 = vld [vmem:[#allocation11 + $0x70] sm:$0xff]   ;;  %v3281_v5 = vld [vmem:[#allocation10 + $0x288] ss:$16 sps:$4 sm:$0xff]  }
 0x1ea   :  { %2098 = vmatprep.subr.bf16.mxu0 %v3187_v7  ;;  %v3323_v7 = vld [vmem:[#allocation11 + $0x30] sm:$0xff]  }
 0x1ed   :  { %2099 = vmatpush1.bf16.msra.mxu0 %v3185_v8  ;;  %v3286_v8 = vld [vmem:[#allocation10 + $0x26c] ss:$16 sps:$4 sm:$0xff]  }
 0x1ee   :  { %2100 = vmatprep.subr.bf16.mxu0 %v3193_v9  ;;  %v3284_v9 = vld [vmem:[#allocation10 + $0x268] ss:$16 sps:$4 sm:$0xff]  }
 0x1f1   :  { %2101 = vmatpush1.bf16.msra.mxu0 %v3191_v11  ;;  %v3325_v11 = vld [vmem:[#allocation11 + $0x28] sm:$0xff]  }
 0x1f2   :  { %2102 = vmatprep.subr.bf16.mxu0 %v3199_v14  ;;  %v3289_v14 = vld [vmem:[#allocation10 + $0x24c] ss:$16 sps:$4 sm:$0xff]  }
 0x1f5   :  { %2103 = vmatpush1.bf16.msra.mxu0 %v3197_v17  ;;  %v3326_v17 = vld [vmem:[#allocation11 + $0x60] sm:$0xff]  }
 0x1f6   :  { %2104 = vmatprep.subr.bf16.mxu0 %v3205_v18  ;;  %v3287_v18 = vld [vmem:[#allocation10 + $0x248] ss:$16 sps:$4 sm:$0xff]  }
 0x1f9   :  { %2105 = vmatpush1.bf16.msra.mxu0 %v3203_v19  ;;  %v3327_v19 = vld [vmem:[#allocation11 + $0x20] sm:$0xff]  }
 0x1fa   :  { %2106 = vmatprep.subr.bf16.mxu0 %v3211_v20  ;;  %v3292_v20 = vld [vmem:[#allocation10 + $0x22c] ss:$16 sps:$4 sm:$0xff]  }
 0x1fd   :  { %2107 = vmatpush1.bf16.msra.mxu0 %v3209_v21  ;;  %v3328_v21 = vld [vmem:[#allocation11 + $0x58] sm:$0xff]  }
 0x1fe   :  { %2108 = vmatprep.subr.bf16.mxu0 %v3217_v22  ;;  %v3290_v22 = vld [vmem:[#allocation10 + $0x228] ss:$16 sps:$4 sm:$0xff]  }
 0x201   :  { %2109 = vmatpush1.bf16.msra.mxu0 %v3215_v23  ;;  %v3329_v23 = vld [vmem:[#allocation11 + $0x18] sm:$0xff]  }
 0x202   :  { %2110 = vmatprep.subr.bf16.mxu0 %v3223_v24  ;;  %v3295_v24 = vld [vmem:[#allocation10 + $0x20c] ss:$16 sps:$4 sm:$0xff]  }
 0x205   :  { %2111 = vmatpush1.bf16.msra.mxu0 %v3221_v25  ;;  %v3330_v25 = vld [vmem:[#allocation11 + $0x50] sm:$0xff]  }
 0x206   :  { %2112 = vmatprep.subr.bf16.mxu0 %v3229_v26  ;;  %v3293_v26 = vld [vmem:[#allocation10 + $0x208] ss:$16 sps:$4 sm:$0xff]  }
 0x209   :  { %2113 = vmatpush2.bf16.msra.mxu0 %v3227_v27  ;;  %v3331_v27 = vld [vmem:[#allocation11 + $0x10] sm:$0xff]  }
 0x20a   :  { %2114 = vmatprep.subr.bf16.mxu0 %v3235_v28  ;;  %v3298_v28 = vld [vmem:[#allocation10 + $0x3ec] ss:$16 sps:$4 sm:$0xff]  }
 0x20d   :  { %2115 = vmatpush2.bf16.msra.mxu0 %v3233_v29  ;;  %v3296_v29 = vld [vmem:[#allocation10 + $0x3e8] ss:$16 sps:$4 sm:$0xff]  }
 0x20e   :  { %2116 = vmatprep.subr.bf16.mxu0 %v3241_v30  ;;  %v3301_v30 = vld [vmem:[#allocation10 + $0x3cc] ss:$16 sps:$4 sm:$0xff]  }
 0x211   :  { %2117 = vmatpush2.bf16.msra.mxu0 %v3239_v31  ;;  %v3299_v31 = vld [vmem:[#allocation10 + $0x3c8] ss:$16 sps:$4 sm:$0xff]  }
 0x212   :  { %2118 = vmatprep.subr.bf16.mxu0 %v3247_v32  ;;  %v3304_v32 = vld [vmem:[#allocation10 + $0x3ac] ss:$16 sps:$4 sm:$0xff]  }
 0x215   :  { %2119 = vmatpush2.bf16.msra.mxu0 %v3245_v33  ;;  %v3302_v33 = vld [vmem:[#allocation10 + $0x3a8] ss:$16 sps:$4 sm:$0xff]  }
 0x216   :  { %2120 = vmatprep.subr.bf16.mxu0 %v3253_v34  ;;  %v3307_v34 = vld [vmem:[#allocation10 + $0x38c] ss:$16 sps:$4 sm:$0xff]  }
 0x219   :  { %2121 = vmatpush2.bf16.msra.mxu0 %v3251_v36  ;;  %v3305_v36 = vld [vmem:[#allocation10 + $0x388] ss:$16 sps:$4 sm:$0xff]  }
 0x21a   :  { %2122 = vmatprep.subr.bf16.mxu0 %v3259_v37  ;;  %v3310_v37 = vld [vmem:[#allocation10 + $0x36c] ss:$16 sps:$4 sm:$0xff]  }
 0x21c   :  { %v1168_v43 = vpop.f32.mrf.mxu0  ;;  %v1209_v44 = vpop.f32.mrf.mxu1 }
 0x21d   :  { %v1169_v45 = vadd.f32 %v1168_v43, %v403_v38  ;;  %2123 = vmatpush2.bf16.msra.mxu0 %v3257_v39  ;;  %v3308_v38 = vld [vmem:[#allocation10 + $0x368] ss:$16 sps:$4 sm:$0xff]   ;;  %v3313_v39 = vld [vmem:[#allocation10 + $0x34c] ss:$16 sps:$4 sm:$0xff]  }
 0x21e   :  { %v1170_v47 = vpop.f32.mrf.mxu0  ;;  %v1211_v48 = vpop.f32.mrf.mxu1  ;;  %2124 = vmatprep.subr.bf16.mxu0 %v3265_v40  ;;  %v3311_v40 = vld [vmem:[#allocation10 + $0x348] ss:$16 sps:$4 sm:$0xff]  }
 0x21f   :  { %v1210_v50 = vadd.f32 %v1209_v44, %v1169_v45  ;;  %v1171_v51 = vadd.f32 %v1170_v47, %v407_v41  ;;  %v3316_v41 = vld [vmem:[#allocation10 + $0x32c] ss:$16 sps:$4 sm:$0xff]   ;;  %v3314_v43 = vld [vmem:[#allocation10 + $0x328] ss:$16 sps:$4 sm:$0xff]  }
 0x220   :  { %v1172_v52 = vpop.f32.mrf.mxu0  ;;  %v1213_v54 = vpop.f32.mrf.mxu1  ;;  %v3319_v44 = vld [vmem:[#allocation10 + $0x30c] ss:$16 sps:$4 sm:$0xff]   ;;  %v3317_v45 = vld [vmem:[#allocation10 + $0x308] ss:$16 sps:$4 sm:$0xff]  }
 0x221   :  { %v1212_v55 = vadd.f32 %v1211_v48, %v1171_v51  ;;  %2125 = vmatpush2.bf16.msra.mxu0 %v3263_v46  ;;  %v1218_v42 = vmax.f32 %v1210_v50, 0.0  ;;  %v3332_v46 = vld [vmem:[#allocation11 + $0x48] sm:$0xff]   ;;  %v3334_v48 = vld [vmem:[#allocation11 + $0x40] sm:$0xff]   ;;  %v3336_v50 = vld [vmem:[#allocation11 + $0xf8] sm:$0xff]  }
 0x222   :  { %v1173_v57 = vpop.f32.mrf.mxu0  ;;  %v1214_v35 = vpop.f32.mrf.mxu1  ;;  %2126 = vmatprep.subr.bf16.mxu0 %v3271_v49  ;;  %v3333_v47 = vld [vmem:[#allocation11 + $0x8] sm:$0xff]   ;;  %v3335_v49 = vld [vmem:[#allocation11] sm:$0xff]   ;;  %v3337_v51 = vld [vmem:[#allocation11 + $0xb8] sm:$0xff]  }
 0x223   :  { %v1219_v53 = vmax.f32 %v1212_v55, 0.0  ;;  %v3632_v60 = vpack.c.bf16 %v1218_v42, %v1218_v42  ;;  %v3338_v52 = vld [vmem:[#allocation11 + $0xf0] sm:$0xff]   ;;  %v3340_v55 = vld [vmem:[#allocation11 + $0xe8] sm:$0xff]   ;;  %v3342_v42 = vld [vmem:[#allocation11 + $0xe0] sm:$0xff]  }
 0x224   :  { %v3339_v54 = vld [vmem:[#allocation11 + $0xb0] sm:$0xff]   ;;  %v3343_v57 = vld [vmem:[#allocation11 + $0xa0] sm:$0xff]   ;;  %v3344_v35 = vld [vmem:[#allocation11 + $0xd8] sm:$0xff]  }
 0x225   :  { %v1223_v58 = vpack.c.bf16 %v1219_v53, %v1219_v53  ;;  %2127 = vmatpush2.bf16.msra.mxu0 %v3269_v56  ;;  %v3341_v56 = vld [vmem:[#allocation11 + $0xa8] sm:$0xff]   ;;  %v3345_v53 = vld [vmem:[#allocation11 + $0x98] sm:$0xff]  }
 0x226   :  { %2872 = vmatprep.subr.bf16.mxu0 %v3320_v2  ;;  %v3351_v2 = vld [vmem:[#allocation11 + $0x80] sm:$0xff]  }
 0x227   :  { %2087 = vmatprep.mubr.bf16.mxu1 %v1223_v58 }
 0x228   :  { %2088 = vmatmul.mubr.bf16.vlgmr.msra.gmra.mxu1 %v3632_v60  ;;  %2129 = vmatmul.mubr.bf16.vlgmr.msra.gmra.mxu0 %v3625_v6  ;;  %v3324_v6 = vld [vmem:[#allocation11 + $0x68] sm:$0xff]  }
 0x229   :  { %2138 = vmatpush1.bf16.msra.mxu1 %v3272_v59  ;;  %2169 = vmatprep.mubr.bf16.mxu1 %v1223_v58  ;;  %v3346_v58 = vld [vmem:[#allocation11 + $0xd0] sm:$0xff]  }
 0x22a   :  { %2139 = vmatprep.subr.bf16.mxu1 %v3277_v61  ;;  %2873 = vmatpush3.bf16.msra.mxu0 %v3321_v3  ;;  %v3347_v59 = vld [vmem:[#allocation11 + $0x90] sm:$0xff]   ;;  %v3348_v61 = vld [vmem:[#allocation11 + $0xc8] sm:$0xff]  }
 0x22b   :  { %2874 = vmatprep.subr.bf16.mxu0 %v3322_v4  ;;  %v1352_v4 = vld [vmem:[%s3661_s6] sm:$0xf] }
 0x22d   :  { %2140 = vmatpush1.bf16.msra.mxu1 %v3275_v62  ;;  %v3349_v62 = vld [vmem:[#allocation11 + $0x88] sm:$0xff]  }
 0x22e   :  { %2141 = vmatprep.subr.bf16.mxu1 %v3280_v63  ;;  %2875 = vmatpush3.bf16.msra.mxu0 %v3323_v7  ;;  %v1361_v7 = vrot.slane %v1352_v4, %v3600_v15  ;;  %v1369_v15 = vrot.slane %v1352_v4, %v3602_v16  ;;  %v2838_v16 = vld [vmem:[%s3663_s8] ss:$0 sm:$0xff]  ;;  %s3517_s8 = smov [#allocation13]  }
 0x22f   :  { %2876 = vmatprep.subr.bf16.mxu0 %v3324_v6  ;;  %s2562_s20 = sshll.u32 %s3517_s8, 4  ;;  %s2563_s20 = int_to_ptr.vmem [resolvable:$true] %s2562_s20 }
 0x230   :  { %s3476_s21 = scalar_lea.vmem %s2563_s20, 128  ;;  %p3481_p3 = scmp.lt.s32.totalorder %s2563_s20, %s2563_s20 }
 0x231   :  { %2142 = vmatpush1.bf16.msra.mxu1 %v3278_v0  ;;  %p3477_p2 = scmp.ne.s32.totalorder %s2563_s20, %s3476_s21  ;;  %p3482_p4 = scmp.lt.s32.totalorder %s3476_s21, %s3476_s21 }
 0x232   :  { %2143 = vmatprep.subr.bf16.mxu1 %v3283_v1  ;;  %2877 = vmatpush3.bf16.msra.mxu0 %v3325_v11  ;;  %v3350_v1 = vld [vmem:[#allocation11 + $0xc0] sm:$0xff]  }
 0x233   :  { %2878 = vmatprep.subr.bf16.mxu0 %v3326_v17  ;;  %p3483_p5 = por %p3482_p4, %p3481_p3 }
 0x235   :  { %2144 = vmatpush1.bf16.msra.mxu1 %v3281_v5  ;;  %v1357_v5 = vrot.slane %v1352_v4, %v3596_v12  ;;  %v1365_v12 = vrot.slane %v1352_v4, %v3598_v13  ;;  %p3484_p6 = pnand %p3483_p5, %p3477_p2 }
 0x236   :  { %2145 = vmatprep.subr.bf16.mxu1 %v3286_v8  ;;  %2879 = vmatpush3.bf16.msra.mxu0 %v3327_v19 }
 0x237   :  { %2880 = vmatprep.subr.bf16.mxu0 %v3328_v21 }
 0x239   :  { %2146 = vmatpush1.bf16.msra.mxu1 %v3284_v9 }
 0x23a   :  { %2147 = vmatprep.subr.bf16.mxu1 %v3289_v14  ;;  %2881 = vmatpush3.bf16.msra.mxu0 %v3329_v23 }
 0x23b   :  { %2882 = vmatprep.subr.bf16.mxu0 %v3330_v25 }
 0x23d   :  { %2148 = vmatpush1.bf16.msra.mxu1 %v3287_v18 }
 0x23e   :  { %2149 = vmatprep.subr.bf16.mxu1 %v3292_v20  ;;  %2883 = vmatpush3.bf16.msra.mxu0 %v3331_v27 }
 0x23f   :  { %2884 = vmatprep.subr.bf16.mxu0 %v3332_v46 }
 0x241   :  { %2150 = vmatpush1.bf16.msra.mxu1 %v3290_v22 }
 0x242   :  { %2151 = vmatprep.subr.bf16.mxu1 %v3295_v24  ;;  %2885 = vmatpush3.bf16.msra.mxu0 %v3333_v47 }
 0x243   :  { %2886 = vmatprep.subr.bf16.mxu0 %v3334_v48 }
 0x245   :  { %2152 = vmatpush1.bf16.msra.mxu1 %v3293_v26 }
 0x246   :  { %2153 = vmatprep.subr.bf16.mxu1 %v3298_v28  ;;  %2887 = vmatpush3.bf16.msra.mxu0 %v3335_v49 }
 0x249   :  { %2154 = vmatpush2.bf16.msra.mxu1 %v3296_v29 }
 0x24a   :  { %2155 = vmatprep.subr.bf16.mxu1 %v3301_v30 }
 0x24d   :  { %2156 = vmatpush2.bf16.msra.mxu1 %v3299_v31 }
 0x24e   :  { %2157 = vmatprep.subr.bf16.mxu1 %v3304_v32 }
 0x251   :  { %2158 = vmatpush2.bf16.msra.mxu1 %v3302_v33 }
 0x252   :  { %2159 = vmatprep.subr.bf16.mxu1 %v3307_v34 }
 0x255   :  { %2160 = vmatpush2.bf16.msra.mxu1 %v3305_v36 }
 0x256   :  { %2161 = vmatprep.subr.bf16.mxu1 %v3310_v37 }
 0x259   :  { %2162 = vmatpush2.bf16.msra.mxu1 %v3308_v38 }
 0x25a   :  { %2163 = vmatprep.subr.bf16.mxu1 %v3313_v39 }
 0x25d   :  { %2164 = vmatpush2.bf16.msra.mxu1 %v3311_v40 }
 0x25e   :  { %2165 = vmatprep.subr.bf16.mxu1 %v3316_v41 }
 0x261   :  { %2166 = vmatpush2.bf16.msra.mxu1 %v3314_v43 }
 0x262   :  { %2167 = vmatprep.subr.bf16.mxu1 %v3319_v44 }
 0x265   :  { %2168 = vmatpush2.bf16.msra.mxu1 %v3317_v45 }
 0x266   :  { %2894 = vmatprep.subr.bf16.mxu1 %v3336_v50  ;;  %v2530_v50 = vand.u32 127, %v119_v10 }
 0x268   :  { %2170 = vmatmul.mubr.bf16.vlgmr.msra.gmra.mxu1 %v3632_v60 }
 0x269   :  { %2895 = vmatpush3.bf16.msra.mxu1 %v3337_v51 }
 0x26a   :  { %2896 = vmatprep.subr.bf16.mxu1 %v3338_v52 }
 0x26d   :  { %2897 = vmatpush3.bf16.msra.mxu1 %v3339_v54 }
 0x26e   :  { %2898 = vmatprep.subr.bf16.mxu1 %v3340_v55 }
 0x271   :  { %2899 = vmatpush3.bf16.msra.mxu1 %v3341_v56 }
 0x272   :  { %2900 = vmatprep.subr.bf16.mxu1 %v3342_v42  ;;  %v3648_v56 = vmul.u32.u64.low 2863311531, %v2530_v50  ;;  %v3649_v42 = vmul.u32.u64.high 2863311531, %v2530_v50, %v3648_v56 }
 0x275   :  { %2901 = vmatpush3.bf16.msra.mxu1 %v3343_v57  ;;  %v2537_v57 = vshrl.u32 %v3649_v42, 1 }
 0x276   :  { %2902 = vmatprep.subr.bf16.mxu1 %v3344_v35 }
 0x277   :  { %v2538_v35 = vmul.u32 3, %v2537_v57 }
 0x279   :  { %2903 = vmatpush3.bf16.msra.mxu1 %v3345_v53 }
 0x27a   :  { %2904 = vmatprep.subr.bf16.mxu1 %v3346_v58 }
 0x27d   :  { %2905 = vmatpush3.bf16.msra.mxu1 %v3347_v59  ;;  %v2539_v59 = vsub.s32 %v2530_v50, %v2538_v35 }
 0x27e   :  { %2906 = vmatprep.subr.bf16.mxu1 %v3348_v61 }
 0x27f   :  { %vm2542_vm2 = vcmp.ne.s32.totalorder %v2539_v59, 0  ;;  %vm2543_vm3 = vcmp.lt.s32.totalorder %v2539_v59, 0 }
 0x280   :  { %vm2544_vm4 = vmand %vm2543_vm3, %vm2542_vm2 }
 0x281   :  { %2907 = vmatpush3.bf16.msra.mxu1 %v3349_v62 }
 0x282   :  { %2908 = vmatprep.subr.bf16.mxu1 %v3350_v1 }
 0x285   :  { %2909 = vmatpush3.bf16.msra.mxu1 %v3351_v2 }
 0x2a8   :  { %v2048_v60 = vpop.f32.mrf.mxu0 }
 0x2a9   :  { %v2049_v8 = vadd.f32 %v2048_v60, %v1357_v5  ;;  %v2545_v60 = vadd.s32 3, %v2539_v59 }
 0x2aa   :  { %v2050_v63 = vpop.f32.mrf.mxu0 }
 0x2ab   :  { %v2051_v11 = vadd.f32 %v2050_v63, %v1361_v7  ;;  %v2546_v10 = vsel %vm2544_vm4, %v2545_v60, %v2539_v59 }
 0x2ac   :  { %v2052_v0 = vpop.f32.mrf.mxu0  ;;  %vm2547_vm5 = vcmp.eq.s32.totalorder %v2546_v10, 2 }
 0x2ae   :  { %v2053_v3 = vpop.f32.mrf.mxu0 }
 0x2e8   :  { %v2089_v6 = vpop.f32.mrf.mxu1  ;;  %v2130_v9 = vpop.f32.mrf.mxu0 }
 0x2e9   :  { %v2090_v14 = vadd.f32 %v2089_v6, %v2049_v8  ;;  %v2131_v28 = vadd.f32 %v2130_v9, %v1365_v12 }
 0x2ea   :  { %v2091_v17 = vpop.f32.mrf.mxu1  ;;  %v2132_v18 = vpop.f32.mrf.mxu0 }
 0x2eb   :  { %v2092_v19 = vadd.f32 %v2091_v17, %v2051_v11  ;;  %v2178_v20 = vmax.f32 %v2090_v14, 0.0  ;;  %v2133_v30 = vadd.f32 %v2132_v18, %v1369_v15 }
 0x2ec   :  { %v2093_v21 = vpop.f32.mrf.mxu1  ;;  %v2134_v22 = vpop.f32.mrf.mxu0 }
 0x2ed   :  { %v2179_v23 = vmax.f32 %v2092_v19, 0.0  ;;  %v2182_v27 = vpack.c.bf16 %v2178_v20, %v2178_v20 }
 0x2ee   :  { %v2094_v24 = vpop.f32.mrf.mxu1  ;;  %v2135_v25 = vpop.f32.mrf.mxu0 }
 0x2ef   :  { %v2183_v26 = vpack.c.bf16 %v2179_v23, %v2179_v23 }
 0x2f1   :  { %2481 = vmatprep.mubr.bf16.mxu0 %v2183_v26 }
 0x2f2   :  { %2482 = vmatmul.mubr.bf16.vlgmr.msra.gmra.mxu0 %v2182_v27 }
 0x328   :  { %v2171_v29 = vpop.f32.mrf.mxu1 }
 0x329   :  { %v2172_v31 = vadd.f32 %v2171_v29, %v2131_v28 }
 0x32a   :  { %v2173_v32 = vpop.f32.mrf.mxu1 }
 0x32b   :  { %v2174_v33 = vadd.f32 %v2173_v32, %v2133_v30  ;;  %v2180_v34 = vmax.f32 %v2172_v31, 0.0 }
 0x32c   :  { %v2175_v36 = vpop.f32.mrf.mxu1 }
 0x32d   :  { %v2181_v37 = vmax.f32 %v2174_v33, 0.0  ;;  %v2184_v40 = vpack.c.bf16 %v2180_v34, %v2180_v34 }
 0x32e   :  { %v2176_v38 = vpop.f32.mrf.mxu1 }
 0x32f   :  { %v2185_v39 = vpack.c.bf16 %v2181_v37, %v2181_v37 }
 0x331   :  { %2521 = vmatprep.mubr.bf16.mxu1 %v2185_v39 }
 0x332   :  { %2522 = vmatmul.mubr.bf16.vlgmr.msra.gmra.mxu1 %v2184_v40 }
 0x3b2   :  { %v2888_v41 = vpop.f32.mrf.mxu0 }
 0x3b4   :  { %v2889_v43 = vpop.f32.mrf.mxu0 }
 0x3b5   :  { %v2890_v45 = vadd.f32 %v2889_v43, %v2888_v41 }
 0x3b6   :  { %v2891_v44 = vpop.f32.mrf.mxu0 }
 0x3b7   :  { %v2484_v48 = vadd.f32 %v2890_v45, %v2838_v16 }
 0x3b8   :  { %v2892_v13 = vpop.f32.mrf.mxu0 }
 0x3f2   :  { %v2910_v46 = vpop.f32.mrf.mxu1 }
 0x3f4   :  { %v2911_v47 = vpop.f32.mrf.mxu1 }
 0x3f5   :  { %v2912_v49 = vadd.f32 %v2911_v47, %v2910_v46 }
 0x3f6   :  { %v2913_v51 = vpop.f32.mrf.mxu1 }
 0x3f7   :  { %v2524_v52 = vadd.f32 %v2912_v49, %v2484_v48 }
 0x3f8   :  { %v2914_v54 = vpop.f32.mrf.mxu1 }
 0x3f9   :  { %v2871_v55 = vmul.f32 -1.442695, %v2524_v52 }
 0x3fb   :  { %3352 = vpow2.f32 %v2871_v55 }
 0x408   :  { %v3353_v53 = vpop.eup %3352 }
 0x409   :  { %v2551_v58 = vadd.f32 1.0, %v3353_v53 }
 0x40b   :  { %3354 = vrcp.f32 %v2551_v58 }
 0x418   :  { %v3355_v61 = vpop.eup %3354 }
 0x419   :  { %v2554_v62 = vsel %vm2547_vm5, %v3355_v61, %v2524_v52 }
 0x41a   :  { %2555 = vst [vmem:[#allocation13] sm:$0xff] %v2554_v62 }
 0x41b   :  { %3487 = shalt.err (!%p3484_p6)
}
 0x41c   :  { %2565 = dma.vmem_to_hbm [thread:$0]  %s2563_s20, 128, %s3664_s9, [#allocation4]  }
 0x41d   :  { %3504 = dma.done.wait [#allocation4], 128  }
 0x41e   :  { %3505 = vsyncadd [#allocation4], 4294967168 }
 0x41f   :  { %2569 = vsyncpa [#allocation3], 1 }
 0x420   :  { %2570 = vsyncpa [#allocation6], 1 }
 0x421   :  { %2571 = vsyncpa [#allocation9], 1 }
 0x422   :  { %2572 = vsyncpa [#allocation12], 1 }
 0x423   :  { %2573 = vsyncpa [#allocation4], 1 }

</bundles_post_ra>
